<compile_context>
chip_gen: v5e
topology: v5e:2x2
jax: 0.10.0
libtpu: 0.0.40
codegen_flags: <defaults>
</compile_context>

<pallas_src>
import functools
import math

import jax
import jax.numpy as jnp
from jax import lax
from jax.experimental import pallas as pl
from jax.experimental.pallas import tpu as pltpu


# ----------------------------------------------------------------------------
# Helpers
# ----------------------------------------------------------------------------
def _round_up(x, m):
    return ((x + m - 1) // m) * m


def _pick_time_block(seq_len, b_pad, input_size, hidden, vmem_budget_bytes=8 << 20):
    """Largest time block (divisor of seq_len) whose per-block scratch +
    double-buffered input block fits the VMEM budget (portable across
    v5e/v6e/v7x scoped-VMEM limits)."""
    lanes_in = _round_up(max(input_size, 1), 128)
    lanes_4h = _round_up(4 * hidden, 128)
    lanes_h = _round_up(hidden, 128)
    # Per-timestep f32 bytes: gx scratch + last-layer h scratch +
    # 2x (double-buffered) input block + 2x output row.
    per_t = 4 * b_pad * (lanes_4h + lanes_h + 2 * lanes_in) + 8 * b_pad
    max_t = max(1, vmem_budget_bytes // per_t)
    if seq_len <= max_t:
        return seq_len
    best = 1
    for t in range(1, max_t + 1):
        if seq_len % t == 0:
            best = t
    # TODO(synk): pad the time axis instead of falling back to a small divisor
    # when seq_len has no divisor close to max_t.
    return best


# ----------------------------------------------------------------------------
# Fused kernel (all layers, wavefront-scheduled recurrence, FC head)
# ----------------------------------------------------------------------------
def _make_fused_lstm_kernel(num_layers, hidden, t_blk, b_pad, in0_dim, unroll):
    H = hidden
    L = num_layers

    def kernel(*refs):
        # ---- unpack: inputs, output, scratch -------------------------------
        x_ref = refs[0]                                # (t_blk, b_pad, I)
        pos = 1
        wih_refs, whh_refs, b_refs = [], [], []
        for _ in range(L):
            wih_refs.append(refs[pos])
            whh_refs.append(refs[pos + 1])
            b_refs.append(refs[pos + 2])
            pos += 3
        h0_ref, c0_ref, fcw_ref, fcb_ref = refs[pos:pos + 4]
        out_ref = refs[pos + 4]                        # (1, 1, t_blk*b_pad)
        h_scr, c_scr, gx_scr, oh_scr = refs[pos + 5:pos + 9]

        # Initial recurrent state loaded once; carried across time blocks.
        @pl.when(pl.program_id(0) == 0)
        def _():
            h_scr[...] = h0_ref[...]
            c_scr[...] = c0_ref[...]

        # Hoisted layer-0 input projection for the whole block: one MXU matmul
        # (t_blk*b_pad rows) with bias folded in, off the recurrence path.
        x2d = x_ref[...].reshape(t_blk * b_pad, in0_dim)
        gx0 = jnp.dot(x2d, wih_refs[0][...],
                      preferred_element_type=jnp.float32) + b_refs[0][...]
        gx_scr[...] = gx0.reshape(t_blk, b_pad, 4 * H)

        # Loop-invariant weights loaded once as values.
        whh_v = [whh_refs[l][...] for l in range(L)]
        wih_v = [None] + [wih_refs[l][...] for l in range(1, L)]
        bias_v = [None] + [b_refs[l][...] for l in range(1, L)]

        hs = tuple(h_scr[l] for l in range(L))
        cs = tuple(c_scr[l] for l in range(L))

        def wave_step(s, hs, cs, active):
            """One wavefront step: layer l processes local time t = s - l.
            Every layer reads only the previous step's carries, so the
            per-layer matmuls are independent and pipeline on the MXU."""
            new_h, new_c = list(hs), list(cs)
            for l in range(L):
                if not active[l]:
                    continue
                if l == 0:
                    gates = gx_scr[s] + jnp.dot(
                        hs[0], whh_v[0], preferred_element_type=jnp.float32)
                else:
                    gates = (jnp.dot(hs[l - 1], wih_v[l],
                                     preferred_element_type=jnp.float32)
                             + jnp.dot(hs[l], whh_v[l],
                                       preferred_element_type=jnp.float32)
                             + bias_v[l])
                # Gate order [i, f, o, g] (permuted host-side): sigmoid over
                # the first 3H lanes, tanh over the last H lanes.
                sig = jax.nn.sigmoid(gates[:, :3 * H])
                i_g = sig[:, 0 * H:1 * H]
                f_g = sig[:, 1 * H:2 * H]
                o_g = sig[:, 2 * H:3 * H]
                g_g = jnp.tanh(gates[:, 3 * H:])
                c_new = f_g * cs[l] + i_g * g_g
                h_new = o_g * jnp.tanh(c_new)
                new_h[l], new_c[l] = h_new, c_new
                if l == L - 1:
                    oh_scr[s - (L - 1)] = h_new      # leading-dim (tile) store
            return tuple(new_h), tuple(new_c)

        total = t_blk + L - 1
        # Pipeline fill: static steps, statically-known active layer subset.
        for s in range(min(L - 1, total)):
            act = [0 <= s - l < t_blk for l in range(L)]
            hs, cs = wave_step(s, hs, cs, act)
        # Steady state: all layers active, partially unrolled loop.
        if t_blk > L - 1:
            def body(s, carry):
                return wave_step(s, carry[0], carry[1], [True] * L)
            hs, cs = lax.fori_loop(L - 1, t_blk, body, (hs, cs), unroll=unroll)
        # Pipeline drain.
        for s in range(max(t_blk, L - 1), total):
            act = [0 <= s - l < t_blk for l in range(L)]
            hs, cs = wave_step(s, hs, cs, act)

        for l in range(L):
            h_scr[l] = hs[l]
            c_scr[l] = cs[l]

        # ---- fused FC(H, 1) head over the whole block, lane-dense row ------
        # fc weight is padded to (8, H); row 0 holds the real weights.
        h_all = oh_scr[...].reshape(t_blk * b_pad, H)
        y8 = lax.dot_general(fcw_ref[...], h_all, (((1,), (1,)), ((), ())),
                             preferred_element_type=jnp.float32)   # (8, t_blk*b_pad)
        y = y8[0:1, :] + fcb_ref[0]
        out_ref[...] = y.reshape(1, 1, t_blk * b_pad).astype(out_ref.dtype)

    return kernel


# ----------------------------------------------------------------------------
# Forward wrapper
# ----------------------------------------------------------------------------
@functools.partial(jax.jit, static_argnames=("num_layers",))
def lstm_model_forward(x_bsi, params, h0_all, c0_all, num_layers):
    """Multi-layer LSTM -> Dropout(eval no-op) -> Linear(H, 1) -> squeeze.

    x_bsi: (B, S, input_size), batch-first like PyTorch. Returns (B, S).
    """
    B, S, I = x_bsi.shape
    H = h0_all.shape[-1]
    L = num_layers
    B_pad = _round_up(max(B, 8), 8)

    t_blk = _pick_time_block(S, B_pad, I, H)
    n_blocks = S // t_blk
    steady = t_blk - (L - 1)
    unroll = int(max(1, min(8, steady)))

    f32 = jnp.float32
    # Time-major and batch padded to a full sublane group.
    # TODO(synk): fold this transpose into the x BlockSpec index_map for very
    # long sequences (it is an extra HBM pass; noise at these sizes).
    x_tmaj = jnp.transpose(x_bsi, (1, 0, 2)).astype(f32)
    x_pad = jnp.pad(x_tmaj, ((0, 0), (0, B_pad - B), (0, 0)))

    # Gate-column permutation [i, f, g, o] (PyTorch) -> [i, f, o, g] (kernel).
    perm = jnp.concatenate([jnp.arange(0, 2 * H),
                            jnp.arange(3 * H, 4 * H),
                            jnp.arange(2 * H, 3 * H)])

    inputs = [x_pad]
    in_specs = [pl.BlockSpec((t_blk, B_pad, I), lambda tb: (tb, 0, 0))]
    for l in range(L):
        p = params[f"layer{l}"]
        in_dim = p["w_ih"].shape[1]
        w_ih = jnp.transpose(p["w_ih"][perm, :]).astype(f32)      # (in_dim, 4H)
        w_hh = jnp.transpose(p["w_hh"][perm, :]).astype(f32)      # (H, 4H)
        bias = (p["b_ih"] + p["b_hh"])[perm].reshape(1, 4 * H).astype(f32)
        inputs += [w_ih, w_hh, bias]
        in_specs += [
            pl.BlockSpec((in_dim, 4 * H), lambda tb: (0, 0)),
            pl.BlockSpec((H, 4 * H), lambda tb: (0, 0)),
            pl.BlockSpec((1, 4 * H), lambda tb: (0, 0)),
        ]

    h0_pad = jnp.pad(h0_all.astype(f32), ((0, 0), (0, B_pad - B), (0, 0)))
    c0_pad = jnp.pad(c0_all.astype(f32), ((0, 0), (0, B_pad - B), (0, 0)))
    fc_w8 = jnp.pad(params["fc_w"].reshape(1, H).astype(f32), ((0, 7), (0, 0)))
    fc_b = params["fc_b"].reshape(1).astype(f32)

    inputs += [h0_pad, c0_pad, fc_w8, fc_b]
    in_specs += [
        pl.BlockSpec((L, B_pad, H), lambda tb: (0, 0, 0)),
        pl.BlockSpec((L, B_pad, H), lambda tb: (0, 0, 0)),
        pl.BlockSpec((8, H), lambda tb: (0, 0)),
        pl.BlockSpec(memory_space=pltpu.MemorySpace.SMEM),     # fc bias scalar
    ]

    kernel = _make_fused_lstm_kernel(L, H, t_blk, B_pad, I, unroll)

    y = pl.pallas_call(
        kernel,
        out_shape=jax.ShapeDtypeStruct((n_blocks, 1, t_blk * B_pad), f32),
        grid_spec=pltpu.PrefetchScalarGridSpec(
            num_scalar_prefetch=0,
            grid=(n_blocks,),                 # sequential recurrence over time blocks
            in_specs=in_specs,
            out_specs=pl.BlockSpec((1, 1, t_blk * B_pad), lambda tb: (tb, 0, 0)),
            scratch_shapes=[
                pltpu.VMEM((L, B_pad, H), f32),           # h carry (per layer)
                pltpu.VMEM((L, B_pad, H), f32),           # c carry (per layer)
                pltpu.VMEM((t_blk, B_pad, 4 * H), f32),   # hoisted layer-0 gate inputs
                pltpu.VMEM((t_blk, B_pad, H), f32),       # last-layer h per timestep
            ],
        ),
        compiler_params=pltpu.CompilerParams(
            dimension_semantics=("arbitrary",),
            vmem_limit_bytes=32 * 1024 * 1024,
        ),
    )(*inputs)

    # Dropout(0.1): identity at inference time.
    # TODO(synk): training-mode stochastic dropout (pltpu.prng_*) not implemented.
    # TODO(synk): for many independent sequences on v7x, add a leading
    #             "parallel" batch-tile grid axis to use the second TensorCore.
    # TODO(synk): bf16 matmul operands (f32 accumulate) when hidden size grows
    #             (v6e/v7x MXU); kept f32 here for exact small-shape accuracy.
    y = y.reshape(S, B_pad)[:, :B]            # row within a block = t*B_pad + b
    return jnp.transpose(y)                   # (B, S)


# ----------------------------------------------------------------------------
# Pure-JAX reference (sanity check)
# ----------------------------------------------------------------------------
def lstm_model_reference(x_bsi, params, h0_all, c0_all, num_layers):
    x = jnp.transpose(x_bsi, (1, 0, 2)).astype(jnp.float32)    # (S, B, I)
    H = h0_all.shape[-1]
    for l in range(num_layers):
        p = params[f"layer{l}"]

        def step(carry, x_t, p=p, H=H):
            h, c = carry
            gates = x_t @ p["w_ih"].T + h @ p["w_hh"].T + p["b_ih"] + p["b_hh"]
            i = jax.nn.sigmoid(gates[:, 0 * H:1 * H])
            f = jax.nn.sigmoid(gates[:, 1 * H:2 * H])
            g = jnp.tanh(gates[:, 2 * H:3 * H])
            o = jax.nn.sigmoid(gates[:, 3 * H:4 * H])
            c = f * c + i * g
            h = o * jnp.tanh(c)
            return (h, c), h

        (_, _), hs = jax.lax.scan(step, (h0_all[l], c0_all[l]), x)
        x = hs
    y = jnp.einsum("sbh,h->sb", x, params["fc_w"][0]) + params["fc_b"][0]
    return jnp.transpose(y)


# ----------------------------------------------------------------------------
# Main
# ----------------------------------------------------------------------------
if __name__ == "__main__":
    # args: input_size=4, hidden_size=32, num_layers=2, batch_size=2, seq_len=8
    input_size, hidden_size, num_layers = 4, 32, 2
    batch, seq_len = 2, 8

    key = jax.random.PRNGKey(0)
    keys = iter(jax.random.split(key, 64))
    stdv = 1.0 / math.sqrt(hidden_size)

    def uni(k, shape):
        return jax.random.uniform(k, shape, jnp.float32, -stdv, stdv)

    params = {}
    for l in range(num_layers):
        in_dim = input_size if l == 0 else hidden_size
        params[f"layer{l}"] = {
            "w_ih": uni(next(keys), (4 * hidden_size, in_dim)),
            "w_hh": uni(next(keys), (4 * hidden_size, hidden_size)),
            "b_ih": uni(next(keys), (4 * hidden_size,)),
            "b_hh": uni(next(keys), (4 * hidden_size,)),
        }
    params["fc_w"] = uni(next(keys), (1, hidden_size))
    params["fc_b"] = uni(next(keys), (1,))

    # Inputs and the (random, per-forward in PyTorch) initial states,
    # deterministic here.
    x = jax.random.normal(next(keys), (batch, seq_len, input_size), jnp.float32)
    h0 = jax.random.normal(next(keys), (num_layers, batch, hidden_size), jnp.float32)
    c0 = jax.random.normal(next(keys), (num_layers, batch, hidden_size), jnp.float32)

    out = lstm_model_forward(x, params, h0, c0, num_layers)
    out = jax.block_until_ready(out)
    assert out.shape == (batch, seq_len), out.shape

    ref = lstm_model_reference(x, params, h0, c0, num_layers)
    assert jnp.allclose(out, ref, atol=1e-4, rtol=1e-4), (
        float(jnp.max(jnp.abs(out - ref))))

    print("KERNEL_OK")
</pallas_src>

<mosaic_0001>
module attributes {stable_mosaic.version = 11 : i64} {
  func.func @kernel(%arg0: i32, %arg1: memref<8x8x4xf32, #tpu.memory_space<vmem>>, %arg2: memref<4x128xf32, #tpu.memory_space<vmem>>, %arg3: memref<32x128xf32, #tpu.memory_space<vmem>>, %arg4: memref<1x128xf32, #tpu.memory_space<vmem>>, %arg5: memref<32x128xf32, #tpu.memory_space<vmem>>, %arg6: memref<32x128xf32, #tpu.memory_space<vmem>>, %arg7: memref<1x128xf32, #tpu.memory_space<vmem>>, %arg8: memref<2x8x32xf32, #tpu.memory_space<vmem>>, %arg9: memref<2x8x32xf32, #tpu.memory_space<vmem>>, %arg10: memref<8x32xf32, #tpu.memory_space<vmem>>, %arg11: memref<1xf32, #tpu.memory_space<smem>>, %arg12: memref<1x1x64xf32, #tpu.memory_space<vmem>>, %arg13: memref<2x8x32xf32, #tpu.memory_space<vmem>>, %arg14: memref<2x8x32xf32, #tpu.memory_space<vmem>>, %arg15: memref<8x8x128xf32, #tpu.memory_space<vmem>>, %arg16: memref<8x8x32xf32, #tpu.memory_space<vmem>>) attributes {dimension_semantics = [#tpu.dimension_semantics<arbitrary>], iteration_bounds = array<i64: 1>, scalar_prefetch = 0 : i64, scratch_operands = 4 : i64, tpu.core_type = #tpu.core_type<tc>, window_params = [{transform_indices = @transform_0, window_bounds = array<i64: 8, 8, 4>}, {pipeline_mode = #tpu.pipeline_mode<synchronous>, transform_indices = @transform_1, window_bounds = array<i64: 4, 128>}, {pipeline_mode = #tpu.pipeline_mode<synchronous>, transform_indices = @transform_2, window_bounds = array<i64: 32, 128>}, {pipeline_mode = #tpu.pipeline_mode<synchronous>, transform_indices = @transform_3, window_bounds = array<i64: 1, 128>}, {pipeline_mode = #tpu.pipeline_mode<synchronous>, transform_indices = @transform_4, window_bounds = array<i64: 32, 128>}, {pipeline_mode = #tpu.pipeline_mode<synchronous>, transform_indices = @transform_5, window_bounds = array<i64: 32, 128>}, {pipeline_mode = #tpu.pipeline_mode<synchronous>, transform_indices = @transform_6, window_bounds = array<i64: 1, 128>}, {pipeline_mode = #tpu.pipeline_mode<synchronous>, transform_indices = @transform_7, window_bounds = array<i64: 2, 8, 32>}, {pipeline_mode = #tpu.pipeline_mode<synchronous>, transform_indices = @transform_8, window_bounds = array<i64: 2, 8, 32>}, {pipeline_mode = #tpu.pipeline_mode<synchronous>, transform_indices = @transform_9, window_bounds = array<i64: 8, 32>}, {transform_indices = @transform_10, window_bounds = array<i64: 1>}, {transform_indices = @transform_11, window_bounds = array<i64: 1, 1, 64>}]} {
    %c0_i32 = arith.constant 0 : i32
    %0 = arith.cmpi eq, %arg0, %c0_i32 : i32
    %1 = arith.extui %0 : i1 to i32
    %c0_i32_0 = arith.constant 0 : i32
    %2 = arith.cmpi ne, %1, %c0_i32_0 : i32
    scf.if %2 {
      %c0_132 = arith.constant 0 : index
      %c0_133 = arith.constant 0 : index
      %c0_134 = arith.constant 0 : index
      %419 = vector.load %arg8[%c0_132, %c0_133, %c0_134] : memref<2x8x32xf32, #tpu.memory_space<vmem>>, vector<2x8x32xf32>
      %c0_135 = arith.constant 0 : index
      %c0_136 = arith.constant 0 : index
      %c0_137 = arith.constant 0 : index
      %420 = vector.load %arg13[%c0_135, %c0_136, %c0_137] : memref<2x8x32xf32, #tpu.memory_space<vmem>>, vector<2x8x32xf32>
      tpu.vector_store %arg13[%c0_135, %c0_136, %c0_137], %419 {strides = array<i32>} : memref<2x8x32xf32, #tpu.memory_space<vmem>>, vector<2x8x32xf32>,
      %c0_138 = arith.constant 0 : index
      %c0_139 = arith.constant 0 : index
      %c0_140 = arith.constant 0 : index
      %421 = vector.load %arg9[%c0_138, %c0_139, %c0_140] : memref<2x8x32xf32, #tpu.memory_space<vmem>>, vector<2x8x32xf32>
      %c0_141 = arith.constant 0 : index
      %c0_142 = arith.constant 0 : index
      %c0_143 = arith.constant 0 : index
      %422 = vector.load %arg14[%c0_141, %c0_142, %c0_143] : memref<2x8x32xf32, #tpu.memory_space<vmem>>, vector<2x8x32xf32>
      tpu.vector_store %arg14[%c0_141, %c0_142, %c0_143], %421 {strides = array<i32>} : memref<2x8x32xf32, #tpu.memory_space<vmem>>, vector<2x8x32xf32>,
    } else {
    }
    %c0 = arith.constant 0 : index
    %c0_1 = arith.constant 0 : index
    %c0_2 = arith.constant 0 : index
    %3 = vector.load %arg1[%c0, %c0_1, %c0_2] : memref<8x8x4xf32, #tpu.memory_space<vmem>>, vector<8x8x4xf32>
    %4 = vector.shape_cast %3 : vector<8x8x4xf32> to vector<64x4xf32>
    %c0_3 = arith.constant 0 : index
    %c0_4 = arith.constant 0 : index
    %5 = vector.load %arg2[%c0_3, %c0_4] : memref<4x128xf32, #tpu.memory_space<vmem>>, vector<4x128xf32>
    %cst = arith.constant dense<0.000000e+00> : vector<64x128xf32>
    %6 = tpu.matmul %4, %5, %cst {dimension_numbers = #tpu.dot_dimension_numbers<[1], [0], [0], [1], [0, 0, 1, 1], [], []>} : vector<64x4xf32>, vector<4x128xf32>, vector<64x128xf32> -> vector<64x128xf32>
    %c0_5 = arith.constant 0 : index
    %c0_6 = arith.constant 0 : index
    %7 = vector.load %arg4[%c0_5, %c0_6] : memref<1x128xf32, #tpu.memory_space<vmem>>, vector<1x128xf32>
    %8 = vector.broadcast %7 : vector<1x128xf32> to vector<64x128xf32>
    %9 = arith.addf %6, %8 : vector<64x128xf32>
    %10 = vector.shape_cast %9 : vector<64x128xf32> to vector<8x8x128xf32>
    %c0_7 = arith.constant 0 : index
    %c0_8 = arith.constant 0 : index
    %c0_9 = arith.constant 0 : index
    %11 = vector.load %arg15[%c0_7, %c0_8, %c0_9] : memref<8x8x128xf32, #tpu.memory_space<vmem>>, vector<8x8x128xf32>
    tpu.vector_store %arg15[%c0_7, %c0_8, %c0_9], %10 {strides = array<i32>} : memref<8x8x128xf32, #tpu.memory_space<vmem>>, vector<8x8x128xf32>,
    %c0_10 = arith.constant 0 : index
    %c0_11 = arith.constant 0 : index
    %12 = vector.load %arg3[%c0_10, %c0_11] : memref<32x128xf32, #tpu.memory_space<vmem>>, vector<32x128xf32>
    %c0_12 = arith.constant 0 : index
    %c0_13 = arith.constant 0 : index
    %13 = vector.load %arg6[%c0_12, %c0_13] : memref<32x128xf32, #tpu.memory_space<vmem>>, vector<32x128xf32>
    %c0_14 = arith.constant 0 : index
    %c0_15 = arith.constant 0 : index
    %14 = vector.load %arg5[%c0_14, %c0_15] : memref<32x128xf32, #tpu.memory_space<vmem>>, vector<32x128xf32>
    %c0_16 = arith.constant 0 : index
    %c0_17 = arith.constant 0 : index
    %15 = vector.load %arg7[%c0_16, %c0_17] : memref<1x128xf32, #tpu.memory_space<vmem>>, vector<1x128xf32>
    %c0_18 = arith.constant 0 : index
    %c0_19 = arith.constant 0 : index
    %c0_20 = arith.constant 0 : index
    %16 = vector.load %arg13[%c0_18, %c0_19, %c0_20] : memref<2x8x32xf32, #tpu.memory_space<vmem>>, vector<1x8x32xf32>
    %17 = vector.shape_cast %16 : vector<1x8x32xf32> to vector<8x32xf32>
    %c1 = arith.constant 1 : index
    %c0_21 = arith.constant 0 : index
    %c0_22 = arith.constant 0 : index
    %18 = vector.load %arg13[%c1, %c0_21, %c0_22] : memref<2x8x32xf32, #tpu.memory_space<vmem>>, vector<1x8x32xf32>
    %19 = vector.shape_cast %18 : vector<1x8x32xf32> to vector<8x32xf32>
    %c0_23 = arith.constant 0 : index
    %c0_24 = arith.constant 0 : index
    %c0_25 = arith.constant 0 : index
    %20 = vector.load %arg14[%c0_23, %c0_24, %c0_25] : memref<2x8x32xf32, #tpu.memory_space<vmem>>, vector<1x8x32xf32>
    %21 = vector.shape_cast %20 : vector<1x8x32xf32> to vector<8x32xf32>
    %c1_26 = arith.constant 1 : index
    %c0_27 = arith.constant 0 : index
    %c0_28 = arith.constant 0 : index
    %22 = vector.load %arg14[%c1_26, %c0_27, %c0_28] : memref<2x8x32xf32, #tpu.memory_space<vmem>>, vector<1x8x32xf32>
    %23 = vector.shape_cast %22 : vector<1x8x32xf32> to vector<8x32xf32>
    %c0_29 = arith.constant 0 : index
    %c0_30 = arith.constant 0 : index
    %c0_31 = arith.constant 0 : index
    %24 = vector.load %arg15[%c0_29, %c0_30, %c0_31] : memref<8x8x128xf32, #tpu.memory_space<vmem>>, vector<1x8x128xf32>
    %25 = vector.shape_cast %24 : vector<1x8x128xf32> to vector<8x128xf32>
    %cst_32 = arith.constant dense<0.000000e+00> : vector<8x128xf32>
    %26 = tpu.matmul %17, %12, %cst_32 {dimension_numbers = #tpu.dot_dimension_numbers<[1], [0], [0], [1], [0, 0, 1, 1], [], []>} : vector<8x32xf32>, vector<32x128xf32>, vector<8x128xf32> -> vector<8x128xf32>
    %27 = arith.addf %25, %26 : vector<8x128xf32>
    %28 = vector.extract_strided_slice %27 {offsets = [0, 0], sizes = [8, 96], strides = [1, 1]} : vector<8x128xf32> to vector<8x96xf32>
    %29 = arith.negf %28 : vector<8x96xf32>
    %30 = math.exp %29 : vector<8x96xf32>
    %cst_33 = arith.constant 1.000000e+00 : f32
    %31 = vector.broadcast %cst_33 : f32 to vector<8x96xf32>
    %32 = arith.addf %31, %30 : vector<8x96xf32>
    %33 = arith.divf %31, %32 : vector<8x96xf32>
    %34 = vector.extract_strided_slice %33 {offsets = [0, 0], sizes = [8, 32], strides = [1, 1]} : vector<8x96xf32> to vector<8x32xf32>
    %35 = vector.extract_strided_slice %33 {offsets = [0, 32], sizes = [8, 32], strides = [1, 1]} : vector<8x96xf32> to vector<8x32xf32>
    %36 = vector.extract_strided_slice %33 {offsets = [0, 64], sizes = [8, 32], strides = [1, 1]} : vector<8x96xf32> to vector<8x32xf32>
    %37 = vector.extract_strided_slice %27 {offsets = [0, 96], sizes = [8, 32], strides = [1, 1]} : vector<8x128xf32> to vector<8x32xf32>
    %38 = math.tanh %37 : vector<8x32xf32>
    %39 = arith.mulf %35, %21 : vector<8x32xf32>
    %40 = arith.mulf %34, %38 : vector<8x32xf32>
    %41 = arith.addf %39, %40 : vector<8x32xf32>
    %42 = math.tanh %41 : vector<8x32xf32>
    %43 = arith.mulf %36, %42 : vector<8x32xf32>
    %c1_i32 = arith.constant 1 : i32
    %44 = arith.index_cast %c1_i32 : i32 to index
    %c0_34 = arith.constant 0 : index
    %c0_35 = arith.constant 0 : index
    %45 = vector.load %arg15[%44, %c0_34, %c0_35] : memref<8x8x128xf32, #tpu.memory_space<vmem>>, vector<1x8x128xf32>
    %46 = vector.shape_cast %45 : vector<1x8x128xf32> to vector<8x128xf32>
    %cst_36 = arith.constant dense<0.000000e+00> : vector<8x128xf32>
    %47 = tpu.matmul %43, %12, %cst_36 {dimension_numbers = #tpu.dot_dimension_numbers<[1], [0], [0], [1], [0, 0, 1, 1], [], []>} : vector<8x32xf32>, vector<32x128xf32>, vector<8x128xf32> -> vector<8x128xf32>
    %48 = arith.addf %46, %47 : vector<8x128xf32>
    %49 = vector.extract_strided_slice %48 {offsets = [0, 0], sizes = [8, 96], strides = [1, 1]} : vector<8x128xf32> to vector<8x96xf32>
    %50 = arith.negf %49 : vector<8x96xf32>
    %51 = math.exp %50 : vector<8x96xf32>
    %cst_37 = arith.constant 1.000000e+00 : f32
    %52 = vector.broadcast %cst_37 : f32 to vector<8x96xf32>
    %53 = arith.addf %52, %51 : vector<8x96xf32>
    %54 = arith.divf %52, %53 : vector<8x96xf32>
    %55 = vector.extract_strided_slice %54 {offsets = [0, 0], sizes = [8, 32], strides = [1, 1]} : vector<8x96xf32> to vector<8x32xf32>
    %56 = vector.extract_strided_slice %54 {offsets = [0, 32], sizes = [8, 32], strides = [1, 1]} : vector<8x96xf32> to vector<8x32xf32>
    %57 = vector.extract_strided_slice %54 {offsets = [0, 64], sizes = [8, 32], strides = [1, 1]} : vector<8x96xf32> to vector<8x32xf32>
    %58 = vector.extract_strided_slice %48 {offsets = [0, 96], sizes = [8, 32], strides = [1, 1]} : vector<8x128xf32> to vector<8x32xf32>
    %59 = math.tanh %58 : vector<8x32xf32>
    %60 = arith.mulf %56, %41 : vector<8x32xf32>
    %61 = arith.mulf %55, %59 : vector<8x32xf32>
    %62 = arith.addf %60, %61 : vector<8x32xf32>
    %63 = math.tanh %62 : vector<8x32xf32>
    %64 = arith.mulf %57, %63 : vector<8x32xf32>
    %cst_38 = arith.constant dense<0.000000e+00> : vector<8x128xf32>
    %65 = tpu.matmul %43, %14, %cst_38 {dimension_numbers = #tpu.dot_dimension_numbers<[1], [0], [0], [1], [0, 0, 1, 1], [], []>} : vector<8x32xf32>, vector<32x128xf32>, vector<8x128xf32> -> vector<8x128xf32>
    %cst_39 = arith.constant dense<0.000000e+00> : vector<8x128xf32>
    %66 = tpu.matmul %19, %13, %cst_39 {dimension_numbers = #tpu.dot_dimension_numbers<[1], [0], [0], [1], [0, 0, 1, 1], [], []>} : vector<8x32xf32>, vector<32x128xf32>, vector<8x128xf32> -> vector<8x128xf32>
    %67 = arith.addf %65, %66 : vector<8x128xf32>
    %68 = vector.broadcast %15 : vector<1x128xf32> to vector<8x128xf32>
    %69 = arith.addf %67, %68 : vector<8x128xf32>
    %70 = vector.extract_strided_slice %69 {offsets = [0, 0], sizes = [8, 96], strides = [1, 1]} : vector<8x128xf32> to vector<8x96xf32>
    %71 = arith.negf %70 : vector<8x96xf32>
    %72 = math.exp %71 : vector<8x96xf32>
    %cst_40 = arith.constant 1.000000e+00 : f32
    %73 = vector.broadcast %cst_40 : f32 to vector<8x96xf32>
    %74 = arith.addf %73, %72 : vector<8x96xf32>
    %75 = arith.divf %73, %74 : vector<8x96xf32>
    %76 = vector.extract_strided_slice %75 {offsets = [0, 0], sizes = [8, 32], strides = [1, 1]} : vector<8x96xf32> to vector<8x32xf32>
    %77 = vector.extract_strided_slice %75 {offsets = [0, 32], sizes = [8, 32], strides = [1, 1]} : vector<8x96xf32> to vector<8x32xf32>
    %78 = vector.extract_strided_slice %75 {offsets = [0, 64], sizes = [8, 32], strides = [1, 1]} : vector<8x96xf32> to vector<8x32xf32>
    %79 = vector.extract_strided_slice %69 {offsets = [0, 96], sizes = [8, 32], strides = [1, 1]} : vector<8x128xf32> to vector<8x32xf32>
    %80 = math.tanh %79 : vector<8x32xf32>
    %81 = arith.mulf %77, %23 : vector<8x32xf32>
    %82 = arith.mulf %76, %80 : vector<8x32xf32>
    %83 = arith.addf %81, %82 : vector<8x32xf32>
    %84 = math.tanh %83 : vector<8x32xf32>
    %85 = arith.mulf %78, %84 : vector<8x32xf32>
    %c1_i32_41 = arith.constant 1 : i32
    %86 = arith.subi %c1_i32, %c1_i32_41 : i32
    %87 = arith.index_cast %86 : i32 to index
    %c0_42 = arith.constant 0 : index
    %c0_43 = arith.constant 0 : index
    %88 = vector.load %arg16[%87, %c0_42, %c0_43] : memref<8x8x32xf32, #tpu.memory_space<vmem>>, vector<1x8x32xf32>
    %89 = vector.shape_cast %88 : vector<1x8x32xf32> to vector<8x32xf32>
    %90 = vector.shape_cast %85 : vector<8x32xf32> to vector<1x8x32xf32>
    tpu.vector_store %arg16[%87, %c0_42, %c0_43], %90 {strides = array<i32>} : memref<8x8x32xf32, #tpu.memory_space<vmem>>, vector<1x8x32xf32>,
    %c2_i32 = arith.constant 2 : i32
    %91 = arith.index_cast %c2_i32 : i32 to index
    %c0_44 = arith.constant 0 : index
    %c0_45 = arith.constant 0 : index
    %92 = vector.load %arg15[%91, %c0_44, %c0_45] : memref<8x8x128xf32, #tpu.memory_space<vmem>>, vector<1x8x128xf32>
    %93 = vector.shape_cast %92 : vector<1x8x128xf32> to vector<8x128xf32>
    %cst_46 = arith.constant dense<0.000000e+00> : vector<8x128xf32>
    %94 = tpu.matmul %64, %12, %cst_46 {dimension_numbers = #tpu.dot_dimension_numbers<[1], [0], [0], [1], [0, 0, 1, 1], [], []>} : vector<8x32xf32>, vector<32x128xf32>, vector<8x128xf32> -> vector<8x128xf32>
    %95 = arith.addf %93, %94 : vector<8x128xf32>
    %96 = vector.extract_strided_slice %95 {offsets = [0, 0], sizes = [8, 96], strides = [1, 1]} : vector<8x128xf32> to vector<8x96xf32>
    %97 = arith.negf %96 : vector<8x96xf32>
    %98 = math.exp %97 : vector<8x96xf32>
    %cst_47 = arith.constant 1.000000e+00 : f32
    %99 = vector.broadcast %cst_47 : f32 to vector<8x96xf32>
    %100 = arith.addf %99, %98 : vector<8x96xf32>
    %101 = arith.divf %99, %100 : vector<8x96xf32>
    %102 = vector.extract_strided_slice %101 {offsets = [0, 0], sizes = [8, 32], strides = [1, 1]} : vector<8x96xf32> to vector<8x32xf32>
    %103 = vector.extract_strided_slice %101 {offsets = [0, 32], sizes = [8, 32], strides = [1, 1]} : vector<8x96xf32> to vector<8x32xf32>
    %104 = vector.extract_strided_slice %101 {offsets = [0, 64], sizes = [8, 32], strides = [1, 1]} : vector<8x96xf32> to vector<8x32xf32>
    %105 = vector.extract_strided_slice %95 {offsets = [0, 96], sizes = [8, 32], strides = [1, 1]} : vector<8x128xf32> to vector<8x32xf32>
    %106 = math.tanh %105 : vector<8x32xf32>
    %107 = arith.mulf %103, %62 : vector<8x32xf32>
    %108 = arith.mulf %102, %106 : vector<8x32xf32>
    %109 = arith.addf %107, %108 : vector<8x32xf32>
    %110 = math.tanh %109 : vector<8x32xf32>
    %111 = arith.mulf %104, %110 : vector<8x32xf32>
    %cst_48 = arith.constant dense<0.000000e+00> : vector<8x128xf32>
    %112 = tpu.matmul %64, %14, %cst_48 {dimension_numbers = #tpu.dot_dimension_numbers<[1], [0], [0], [1], [0, 0, 1, 1], [], []>} : vector<8x32xf32>, vector<32x128xf32>, vector<8x128xf32> -> vector<8x128xf32>
    %cst_49 = arith.constant dense<0.000000e+00> : vector<8x128xf32>
    %113 = tpu.matmul %85, %13, %cst_49 {dimension_numbers = #tpu.dot_dimension_numbers<[1], [0], [0], [1], [0, 0, 1, 1], [], []>} : vector<8x32xf32>, vector<32x128xf32>, vector<8x128xf32> -> vector<8x128xf32>
    %114 = arith.addf %112, %113 : vector<8x128xf32>
    %115 = vector.broadcast %15 : vector<1x128xf32> to vector<8x128xf32>
    %116 = arith.addf %114, %115 : vector<8x128xf32>
    %117 = vector.extract_strided_slice %116 {offsets = [0, 0], sizes = [8, 96], strides = [1, 1]} : vector<8x128xf32> to vector<8x96xf32>
    %118 = arith.negf %117 : vector<8x96xf32>
    %119 = math.exp %118 : vector<8x96xf32>
    %cst_50 = arith.constant 1.000000e+00 : f32
    %120 = vector.broadcast %cst_50 : f32 to vector<8x96xf32>
    %121 = arith.addf %120, %119 : vector<8x96xf32>
    %122 = arith.divf %120, %121 : vector<8x96xf32>
    %123 = vector.extract_strided_slice %122 {offsets = [0, 0], sizes = [8, 32], strides = [1, 1]} : vector<8x96xf32> to vector<8x32xf32>
    %124 = vector.extract_strided_slice %122 {offsets = [0, 32], sizes = [8, 32], strides = [1, 1]} : vector<8x96xf32> to vector<8x32xf32>
    %125 = vector.extract_strided_slice %122 {offsets = [0, 64], sizes = [8, 32], strides = [1, 1]} : vector<8x96xf32> to vector<8x32xf32>
    %126 = vector.extract_strided_slice %116 {offsets = [0, 96], sizes = [8, 32], strides = [1, 1]} : vector<8x128xf32> to vector<8x32xf32>
    %127 = math.tanh %126 : vector<8x32xf32>
    %128 = arith.mulf %124, %83 : vector<8x32xf32>
    %129 = arith.mulf %123, %127 : vector<8x32xf32>
    %130 = arith.addf %128, %129 : vector<8x32xf32>
    %131 = math.tanh %130 : vector<8x32xf32>
    %132 = arith.mulf %125, %131 : vector<8x32xf32>
    %c1_i32_51 = arith.constant 1 : i32
    %133 = arith.subi %c2_i32, %c1_i32_51 : i32
    %134 = arith.index_cast %133 : i32 to index
    %c0_52 = arith.constant 0 : index
    %c0_53 = arith.constant 0 : index
    %135 = vector.load %arg16[%134, %c0_52, %c0_53] : memref<8x8x32xf32, #tpu.memory_space<vmem>>, vector<1x8x32xf32>
    %136 = vector.shape_cast %135 : vector<1x8x32xf32> to vector<8x32xf32>
    %137 = vector.shape_cast %132 : vector<8x32xf32> to vector<1x8x32xf32>
    tpu.vector_store %arg16[%134, %c0_52, %c0_53], %137 {strides = array<i32>} : memref<8x8x32xf32, #tpu.memory_space<vmem>>, vector<1x8x32xf32>,
    %c3_i32 = arith.constant 3 : i32
    %138 = arith.index_cast %c3_i32 : i32 to index
    %c0_54 = arith.constant 0 : index
    %c0_55 = arith.constant 0 : index
    %139 = vector.load %arg15[%138, %c0_54, %c0_55] : memref<8x8x128xf32, #tpu.memory_space<vmem>>, vector<1x8x128xf32>
    %140 = vector.shape_cast %139 : vector<1x8x128xf32> to vector<8x128xf32>
    %cst_56 = arith.constant dense<0.000000e+00> : vector<8x128xf32>
    %141 = tpu.matmul %111, %12, %cst_56 {dimension_numbers = #tpu.dot_dimension_numbers<[1], [0], [0], [1], [0, 0, 1, 1], [], []>} : vector<8x32xf32>, vector<32x128xf32>, vector<8x128xf32> -> vector<8x128xf32>
    %142 = arith.addf %140, %141 : vector<8x128xf32>
    %143 = vector.extract_strided_slice %142 {offsets = [0, 0], sizes = [8, 96], strides = [1, 1]} : vector<8x128xf32> to vector<8x96xf32>
    %144 = arith.negf %143 : vector<8x96xf32>
    %145 = math.exp %144 : vector<8x96xf32>
    %cst_57 = arith.constant 1.000000e+00 : f32
    %146 = vector.broadcast %cst_57 : f32 to vector<8x96xf32>
    %147 = arith.addf %146, %145 : vector<8x96xf32>
    %148 = arith.divf %146, %147 : vector<8x96xf32>
    %149 = vector.extract_strided_slice %148 {offsets = [0, 0], sizes = [8, 32], strides = [1, 1]} : vector<8x96xf32> to vector<8x32xf32>
    %150 = vector.extract_strided_slice %148 {offsets = [0, 32], sizes = [8, 32], strides = [1, 1]} : vector<8x96xf32> to vector<8x32xf32>
    %151 = vector.extract_strided_slice %148 {offsets = [0, 64], sizes = [8, 32], strides = [1, 1]} : vector<8x96xf32> to vector<8x32xf32>
    %152 = vector.extract_strided_slice %142 {offsets = [0, 96], sizes = [8, 32], strides = [1, 1]} : vector<8x128xf32> to vector<8x32xf32>
    %153 = math.tanh %152 : vector<8x32xf32>
    %154 = arith.mulf %150, %109 : vector<8x32xf32>
    %155 = arith.mulf %149, %153 : vector<8x32xf32>
    %156 = arith.addf %154, %155 : vector<8x32xf32>
    %157 = math.tanh %156 : vector<8x32xf32>
    %158 = arith.mulf %151, %157 : vector<8x32xf32>
    %cst_58 = arith.constant dense<0.000000e+00> : vector<8x128xf32>
    %159 = tpu.matmul %111, %14, %cst_58 {dimension_numbers = #tpu.dot_dimension_numbers<[1], [0], [0], [1], [0, 0, 1, 1], [], []>} : vector<8x32xf32>, vector<32x128xf32>, vector<8x128xf32> -> vector<8x128xf32>
    %cst_59 = arith.constant dense<0.000000e+00> : vector<8x128xf32>
    %160 = tpu.matmul %132, %13, %cst_59 {dimension_numbers = #tpu.dot_dimension_numbers<[1], [0], [0], [1], [0, 0, 1, 1], [], []>} : vector<8x32xf32>, vector<32x128xf32>, vector<8x128xf32> -> vector<8x128xf32>
    %161 = arith.addf %159, %160 : vector<8x128xf32>
    %162 = vector.broadcast %15 : vector<1x128xf32> to vector<8x128xf32>
    %163 = arith.addf %161, %162 : vector<8x128xf32>
    %164 = vector.extract_strided_slice %163 {offsets = [0, 0], sizes = [8, 96], strides = [1, 1]} : vector<8x128xf32> to vector<8x96xf32>
    %165 = arith.negf %164 : vector<8x96xf32>
    %166 = math.exp %165 : vector<8x96xf32>
    %cst_60 = arith.constant 1.000000e+00 : f32
    %167 = vector.broadcast %cst_60 : f32 to vector<8x96xf32>
    %168 = arith.addf %167, %166 : vector<8x96xf32>
    %169 = arith.divf %167, %168 : vector<8x96xf32>
    %170 = vector.extract_strided_slice %169 {offsets = [0, 0], sizes = [8, 32], strides = [1, 1]} : vector<8x96xf32> to vector<8x32xf32>
    %171 = vector.extract_strided_slice %169 {offsets = [0, 32], sizes = [8, 32], strides = [1, 1]} : vector<8x96xf32> to vector<8x32xf32>
    %172 = vector.extract_strided_slice %169 {offsets = [0, 64], sizes = [8, 32], strides = [1, 1]} : vector<8x96xf32> to vector<8x32xf32>
    %173 = vector.extract_strided_slice %163 {offsets = [0, 96], sizes = [8, 32], strides = [1, 1]} : vector<8x128xf32> to vector<8x32xf32>
    %174 = math.tanh %173 : vector<8x32xf32>
    %175 = arith.mulf %171, %130 : vector<8x32xf32>
    %176 = arith.mulf %170, %174 : vector<8x32xf32>
    %177 = arith.addf %175, %176 : vector<8x32xf32>
    %178 = math.tanh %177 : vector<8x32xf32>
    %179 = arith.mulf %172, %178 : vector<8x32xf32>
    %c1_i32_61 = arith.constant 1 : i32
    %180 = arith.subi %c3_i32, %c1_i32_61 : i32
    %181 = arith.index_cast %180 : i32 to index
    %c0_62 = arith.constant 0 : index
    %c0_63 = arith.constant 0 : index
    %182 = vector.load %arg16[%181, %c0_62, %c0_63] : memref<8x8x32xf32, #tpu.memory_space<vmem>>, vector<1x8x32xf32>
    %183 = vector.shape_cast %182 : vector<1x8x32xf32> to vector<8x32xf32>
    %184 = vector.shape_cast %179 : vector<8x32xf32> to vector<1x8x32xf32>
    tpu.vector_store %arg16[%181, %c0_62, %c0_63], %184 {strides = array<i32>} : memref<8x8x32xf32, #tpu.memory_space<vmem>>, vector<1x8x32xf32>,
    %c4_i32 = arith.constant 4 : i32
    %185 = arith.index_cast %c4_i32 : i32 to index
    %c0_64 = arith.constant 0 : index
    %c0_65 = arith.constant 0 : index
    %186 = vector.load %arg15[%185, %c0_64, %c0_65] : memref<8x8x128xf32, #tpu.memory_space<vmem>>, vector<1x8x128xf32>
    %187 = vector.shape_cast %186 : vector<1x8x128xf32> to vector<8x128xf32>
    %cst_66 = arith.constant dense<0.000000e+00> : vector<8x128xf32>
    %188 = tpu.matmul %158, %12, %cst_66 {dimension_numbers = #tpu.dot_dimension_numbers<[1], [0], [0], [1], [0, 0, 1, 1], [], []>} : vector<8x32xf32>, vector<32x128xf32>, vector<8x128xf32> -> vector<8x128xf32>
    %189 = arith.addf %187, %188 : vector<8x128xf32>
    %190 = vector.extract_strided_slice %189 {offsets = [0, 0], sizes = [8, 96], strides = [1, 1]} : vector<8x128xf32> to vector<8x96xf32>
    %191 = arith.negf %190 : vector<8x96xf32>
    %192 = math.exp %191 : vector<8x96xf32>
    %cst_67 = arith.constant 1.000000e+00 : f32
    %193 = vector.broadcast %cst_67 : f32 to vector<8x96xf32>
    %194 = arith.addf %193, %192 : vector<8x96xf32>
    %195 = arith.divf %193, %194 : vector<8x96xf32>
    %196 = vector.extract_strided_slice %195 {offsets = [0, 0], sizes = [8, 32], strides = [1, 1]} : vector<8x96xf32> to vector<8x32xf32>
    %197 = vector.extract_strided_slice %195 {offsets = [0, 32], sizes = [8, 32], strides = [1, 1]} : vector<8x96xf32> to vector<8x32xf32>
    %198 = vector.extract_strided_slice %195 {offsets = [0, 64], sizes = [8, 32], strides = [1, 1]} : vector<8x96xf32> to vector<8x32xf32>
    %199 = vector.extract_strided_slice %189 {offsets = [0, 96], sizes = [8, 32], strides = [1, 1]} : vector<8x128xf32> to vector<8x32xf32>
    %200 = math.tanh %199 : vector<8x32xf32>
    %201 = arith.mulf %197, %156 : vector<8x32xf32>
    %202 = arith.mulf %196, %200 : vector<8x32xf32>
    %203 = arith.addf %201, %202 : vector<8x32xf32>
    %204 = math.tanh %203 : vector<8x32xf32>
    %205 = arith.mulf %198, %204 : vector<8x32xf32>
    %cst_68 = arith.constant dense<0.000000e+00> : vector<8x128xf32>
    %206 = tpu.matmul %158, %14, %cst_68 {dimension_numbers = #tpu.dot_dimension_numbers<[1], [0], [0], [1], [0, 0, 1, 1], [], []>} : vector<8x32xf32>, vector<32x128xf32>, vector<8x128xf32> -> vector<8x128xf32>
    %cst_69 = arith.constant dense<0.000000e+00> : vector<8x128xf32>
    %207 = tpu.matmul %179, %13, %cst_69 {dimension_numbers = #tpu.dot_dimension_numbers<[1], [0], [0], [1], [0, 0, 1, 1], [], []>} : vector<8x32xf32>, vector<32x128xf32>, vector<8x128xf32> -> vector<8x128xf32>
    %208 = arith.addf %206, %207 : vector<8x128xf32>
    %209 = vector.broadcast %15 : vector<1x128xf32> to vector<8x128xf32>
    %210 = arith.addf %208, %209 : vector<8x128xf32>
    %211 = vector.extract_strided_slice %210 {offsets = [0, 0], sizes = [8, 96], strides = [1, 1]} : vector<8x128xf32> to vector<8x96xf32>
    %212 = arith.negf %211 : vector<8x96xf32>
    %213 = math.exp %212 : vector<8x96xf32>
    %cst_70 = arith.constant 1.000000e+00 : f32
    %214 = vector.broadcast %cst_70 : f32 to vector<8x96xf32>
    %215 = arith.addf %214, %213 : vector<8x96xf32>
    %216 = arith.divf %214, %215 : vector<8x96xf32>
    %217 = vector.extract_strided_slice %216 {offsets = [0, 0], sizes = [8, 32], strides = [1, 1]} : vector<8x96xf32> to vector<8x32xf32>
    %218 = vector.extract_strided_slice %216 {offsets = [0, 32], sizes = [8, 32], strides = [1, 1]} : vector<8x96xf32> to vector<8x32xf32>
    %219 = vector.extract_strided_slice %216 {offsets = [0, 64], sizes = [8, 32], strides = [1, 1]} : vector<8x96xf32> to vector<8x32xf32>
    %220 = vector.extract_strided_slice %210 {offsets = [0, 96], sizes = [8, 32], strides = [1, 1]} : vector<8x128xf32> to vector<8x32xf32>
    %221 = math.tanh %220 : vector<8x32xf32>
    %222 = arith.mulf %218, %177 : vector<8x32xf32>
    %223 = arith.mulf %217, %221 : vector<8x32xf32>
    %224 = arith.addf %222, %223 : vector<8x32xf32>
    %225 = math.tanh %224 : vector<8x32xf32>
    %226 = arith.mulf %219, %225 : vector<8x32xf32>
    %c1_i32_71 = arith.constant 1 : i32
    %227 = arith.subi %c4_i32, %c1_i32_71 : i32
    %228 = arith.index_cast %227 : i32 to index
    %c0_72 = arith.constant 0 : index
    %c0_73 = arith.constant 0 : index
    %229 = vector.load %arg16[%228, %c0_72, %c0_73] : memref<8x8x32xf32, #tpu.memory_space<vmem>>, vector<1x8x32xf32>
    %230 = vector.shape_cast %229 : vector<1x8x32xf32> to vector<8x32xf32>
    %231 = vector.shape_cast %226 : vector<8x32xf32> to vector<1x8x32xf32>
    tpu.vector_store %arg16[%228, %c0_72, %c0_73], %231 {strides = array<i32>} : memref<8x8x32xf32, #tpu.memory_space<vmem>>, vector<1x8x32xf32>,
    %c5_i32 = arith.constant 5 : i32
    %232 = arith.index_cast %c5_i32 : i32 to index
    %c0_74 = arith.constant 0 : index
    %c0_75 = arith.constant 0 : index
    %233 = vector.load %arg15[%232, %c0_74, %c0_75] : memref<8x8x128xf32, #tpu.memory_space<vmem>>, vector<1x8x128xf32>
    %234 = vector.shape_cast %233 : vector<1x8x128xf32> to vector<8x128xf32>
    %cst_76 = arith.constant dense<0.000000e+00> : vector<8x128xf32>
    %235 = tpu.matmul %205, %12, %cst_76 {dimension_numbers = #tpu.dot_dimension_numbers<[1], [0], [0], [1], [0, 0, 1, 1], [], []>} : vector<8x32xf32>, vector<32x128xf32>, vector<8x128xf32> -> vector<8x128xf32>
    %236 = arith.addf %234, %235 : vector<8x128xf32>
    %237 = vector.extract_strided_slice %236 {offsets = [0, 0], sizes = [8, 96], strides = [1, 1]} : vector<8x128xf32> to vector<8x96xf32>
    %238 = arith.negf %237 : vector<8x96xf32>
    %239 = math.exp %238 : vector<8x96xf32>
    %cst_77 = arith.constant 1.000000e+00 : f32
    %240 = vector.broadcast %cst_77 : f32 to vector<8x96xf32>
    %241 = arith.addf %240, %239 : vector<8x96xf32>
    %242 = arith.divf %240, %241 : vector<8x96xf32>
    %243 = vector.extract_strided_slice %242 {offsets = [0, 0], sizes = [8, 32], strides = [1, 1]} : vector<8x96xf32> to vector<8x32xf32>
    %244 = vector.extract_strided_slice %242 {offsets = [0, 32], sizes = [8, 32], strides = [1, 1]} : vector<8x96xf32> to vector<8x32xf32>
    %245 = vector.extract_strided_slice %242 {offsets = [0, 64], sizes = [8, 32], strides = [1, 1]} : vector<8x96xf32> to vector<8x32xf32>
    %246 = vector.extract_strided_slice %236 {offsets = [0, 96], sizes = [8, 32], strides = [1, 1]} : vector<8x128xf32> to vector<8x32xf32>
    %247 = math.tanh %246 : vector<8x32xf32>
    %248 = arith.mulf %244, %203 : vector<8x32xf32>
    %249 = arith.mulf %243, %247 : vector<8x32xf32>
    %250 = arith.addf %248, %249 : vector<8x32xf32>
    %251 = math.tanh %250 : vector<8x32xf32>
    %252 = arith.mulf %245, %251 : vector<8x32xf32>
    %cst_78 = arith.constant dense<0.000000e+00> : vector<8x128xf32>
    %253 = tpu.matmul %205, %14, %cst_78 {dimension_numbers = #tpu.dot_dimension_numbers<[1], [0], [0], [1], [0, 0, 1, 1], [], []>} : vector<8x32xf32>, vector<32x128xf32>, vector<8x128xf32> -> vector<8x128xf32>
    %cst_79 = arith.constant dense<0.000000e+00> : vector<8x128xf32>
    %254 = tpu.matmul %226, %13, %cst_79 {dimension_numbers = #tpu.dot_dimension_numbers<[1], [0], [0], [1], [0, 0, 1, 1], [], []>} : vector<8x32xf32>, vector<32x128xf32>, vector<8x128xf32> -> vector<8x128xf32>
    %255 = arith.addf %253, %254 : vector<8x128xf32>
    %256 = vector.broadcast %15 : vector<1x128xf32> to vector<8x128xf32>
    %257 = arith.addf %255, %256 : vector<8x128xf32>
    %258 = vector.extract_strided_slice %257 {offsets = [0, 0], sizes = [8, 96], strides = [1, 1]} : vector<8x128xf32> to vector<8x96xf32>
    %259 = arith.negf %258 : vector<8x96xf32>
    %260 = math.exp %259 : vector<8x96xf32>
    %cst_80 = arith.constant 1.000000e+00 : f32
    %261 = vector.broadcast %cst_80 : f32 to vector<8x96xf32>
    %262 = arith.addf %261, %260 : vector<8x96xf32>
    %263 = arith.divf %261, %262 : vector<8x96xf32>
    %264 = vector.extract_strided_slice %263 {offsets = [0, 0], sizes = [8, 32], strides = [1, 1]} : vector<8x96xf32> to vector<8x32xf32>
    %265 = vector.extract_strided_slice %263 {offsets = [0, 32], sizes = [8, 32], strides = [1, 1]} : vector<8x96xf32> to vector<8x32xf32>
    %266 = vector.extract_strided_slice %263 {offsets = [0, 64], sizes = [8, 32], strides = [1, 1]} : vector<8x96xf32> to vector<8x32xf32>
    %267 = vector.extract_strided_slice %257 {offsets = [0, 96], sizes = [8, 32], strides = [1, 1]} : vector<8x128xf32> to vector<8x32xf32>
    %268 = math.tanh %267 : vector<8x32xf32>
    %269 = arith.mulf %265, %224 : vector<8x32xf32>
    %270 = arith.mulf %264, %268 : vector<8x32xf32>
    %271 = arith.addf %269, %270 : vector<8x32xf32>
    %272 = math.tanh %271 : vector<8x32xf32>
    %273 = arith.mulf %266, %272 : vector<8x32xf32>
    %c1_i32_81 = arith.constant 1 : i32
    %274 = arith.subi %c5_i32, %c1_i32_81 : i32
    %275 = arith.index_cast %274 : i32 to index
    %c0_82 = arith.constant 0 : index
    %c0_83 = arith.constant 0 : index
    %276 = vector.load %arg16[%275, %c0_82, %c0_83] : memref<8x8x32xf32, #tpu.memory_space<vmem>>, vector<1x8x32xf32>
    %277 = vector.shape_cast %276 : vector<1x8x32xf32> to vector<8x32xf32>
    %278 = vector.shape_cast %273 : vector<8x32xf32> to vector<1x8x32xf32>
    tpu.vector_store %arg16[%275, %c0_82, %c0_83], %278 {strides = array<i32>} : memref<8x8x32xf32, #tpu.memory_space<vmem>>, vector<1x8x32xf32>,
    %c6_i32 = arith.constant 6 : i32
    %279 = arith.index_cast %c6_i32 : i32 to index
    %c0_84 = arith.constant 0 : index
    %c0_85 = arith.constant 0 : index
    %280 = vector.load %arg15[%279, %c0_84, %c0_85] : memref<8x8x128xf32, #tpu.memory_space<vmem>>, vector<1x8x128xf32>
    %281 = vector.shape_cast %280 : vector<1x8x128xf32> to vector<8x128xf32>
    %cst_86 = arith.constant dense<0.000000e+00> : vector<8x128xf32>
    %282 = tpu.matmul %252, %12, %cst_86 {dimension_numbers = #tpu.dot_dimension_numbers<[1], [0], [0], [1], [0, 0, 1, 1], [], []>} : vector<8x32xf32>, vector<32x128xf32>, vector<8x128xf32> -> vector<8x128xf32>
    %283 = arith.addf %281, %282 : vector<8x128xf32>
    %284 = vector.extract_strided_slice %283 {offsets = [0, 0], sizes = [8, 96], strides = [1, 1]} : vector<8x128xf32> to vector<8x96xf32>
    %285 = arith.negf %284 : vector<8x96xf32>
    %286 = math.exp %285 : vector<8x96xf32>
    %cst_87 = arith.constant 1.000000e+00 : f32
    %287 = vector.broadcast %cst_87 : f32 to vector<8x96xf32>
    %288 = arith.addf %287, %286 : vector<8x96xf32>
    %289 = arith.divf %287, %288 : vector<8x96xf32>
    %290 = vector.extract_strided_slice %289 {offsets = [0, 0], sizes = [8, 32], strides = [1, 1]} : vector<8x96xf32> to vector<8x32xf32>
    %291 = vector.extract_strided_slice %289 {offsets = [0, 32], sizes = [8, 32], strides = [1, 1]} : vector<8x96xf32> to vector<8x32xf32>
    %292 = vector.extract_strided_slice %289 {offsets = [0, 64], sizes = [8, 32], strides = [1, 1]} : vector<8x96xf32> to vector<8x32xf32>
    %293 = vector.extract_strided_slice %283 {offsets = [0, 96], sizes = [8, 32], strides = [1, 1]} : vector<8x128xf32> to vector<8x32xf32>
    %294 = math.tanh %293 : vector<8x32xf32>
    %295 = arith.mulf %291, %250 : vector<8x32xf32>
    %296 = arith.mulf %290, %294 : vector<8x32xf32>
    %297 = arith.addf %295, %296 : vector<8x32xf32>
    %298 = math.tanh %297 : vector<8x32xf32>
    %299 = arith.mulf %292, %298 : vector<8x32xf32>
    %cst_88 = arith.constant dense<0.000000e+00> : vector<8x128xf32>
    %300 = tpu.matmul %252, %14, %cst_88 {dimension_numbers = #tpu.dot_dimension_numbers<[1], [0], [0], [1], [0, 0, 1, 1], [], []>} : vector<8x32xf32>, vector<32x128xf32>, vector<8x128xf32> -> vector<8x128xf32>
    %cst_89 = arith.constant dense<0.000000e+00> : vector<8x128xf32>
    %301 = tpu.matmul %273, %13, %cst_89 {dimension_numbers = #tpu.dot_dimension_numbers<[1], [0], [0], [1], [0, 0, 1, 1], [], []>} : vector<8x32xf32>, vector<32x128xf32>, vector<8x128xf32> -> vector<8x128xf32>
    %302 = arith.addf %300, %301 : vector<8x128xf32>
    %303 = vector.broadcast %15 : vector<1x128xf32> to vector<8x128xf32>
    %304 = arith.addf %302, %303 : vector<8x128xf32>
    %305 = vector.extract_strided_slice %304 {offsets = [0, 0], sizes = [8, 96], strides = [1, 1]} : vector<8x128xf32> to vector<8x96xf32>
    %306 = arith.negf %305 : vector<8x96xf32>
    %307 = math.exp %306 : vector<8x96xf32>
    %cst_90 = arith.constant 1.000000e+00 : f32
    %308 = vector.broadcast %cst_90 : f32 to vector<8x96xf32>
    %309 = arith.addf %308, %307 : vector<8x96xf32>
    %310 = arith.divf %308, %309 : vector<8x96xf32>
    %311 = vector.extract_strided_slice %310 {offsets = [0, 0], sizes = [8, 32], strides = [1, 1]} : vector<8x96xf32> to vector<8x32xf32>
    %312 = vector.extract_strided_slice %310 {offsets = [0, 32], sizes = [8, 32], strides = [1, 1]} : vector<8x96xf32> to vector<8x32xf32>
    %313 = vector.extract_strided_slice %310 {offsets = [0, 64], sizes = [8, 32], strides = [1, 1]} : vector<8x96xf32> to vector<8x32xf32>
    %314 = vector.extract_strided_slice %304 {offsets = [0, 96], sizes = [8, 32], strides = [1, 1]} : vector<8x128xf32> to vector<8x32xf32>
    %315 = math.tanh %314 : vector<8x32xf32>
    %316 = arith.mulf %312, %271 : vector<8x32xf32>
    %317 = arith.mulf %311, %315 : vector<8x32xf32>
    %318 = arith.addf %316, %317 : vector<8x32xf32>
    %319 = math.tanh %318 : vector<8x32xf32>
    %320 = arith.mulf %313, %319 : vector<8x32xf32>
    %c1_i32_91 = arith.constant 1 : i32
    %321 = arith.subi %c6_i32, %c1_i32_91 : i32
    %322 = arith.index_cast %321 : i32 to index
    %c0_92 = arith.constant 0 : index
    %c0_93 = arith.constant 0 : index
    %323 = vector.load %arg16[%322, %c0_92, %c0_93] : memref<8x8x32xf32, #tpu.memory_space<vmem>>, vector<1x8x32xf32>
    %324 = vector.shape_cast %323 : vector<1x8x32xf32> to vector<8x32xf32>
    %325 = vector.shape_cast %320 : vector<8x32xf32> to vector<1x8x32xf32>
    tpu.vector_store %arg16[%322, %c0_92, %c0_93], %325 {strides = array<i32>} : memref<8x8x32xf32, #tpu.memory_space<vmem>>, vector<1x8x32xf32>,
    %c7_i32 = arith.constant 7 : i32
    %326 = arith.index_cast %c7_i32 : i32 to index
    %c0_94 = arith.constant 0 : index
    %c0_95 = arith.constant 0 : index
    %327 = vector.load %arg15[%326, %c0_94, %c0_95] : memref<8x8x128xf32, #tpu.memory_space<vmem>>, vector<1x8x128xf32>
    %328 = vector.shape_cast %327 : vector<1x8x128xf32> to vector<8x128xf32>
    %cst_96 = arith.constant dense<0.000000e+00> : vector<8x128xf32>
    %329 = tpu.matmul %299, %12, %cst_96 {dimension_numbers = #tpu.dot_dimension_numbers<[1], [0], [0], [1], [0, 0, 1, 1], [], []>} : vector<8x32xf32>, vector<32x128xf32>, vector<8x128xf32> -> vector<8x128xf32>
    %330 = arith.addf %328, %329 : vector<8x128xf32>
    %331 = vector.extract_strided_slice %330 {offsets = [0, 0], sizes = [8, 96], strides = [1, 1]} : vector<8x128xf32> to vector<8x96xf32>
    %332 = arith.negf %331 : vector<8x96xf32>
    %333 = math.exp %332 : vector<8x96xf32>
    %cst_97 = arith.constant 1.000000e+00 : f32
    %334 = vector.broadcast %cst_97 : f32 to vector<8x96xf32>
    %335 = arith.addf %334, %333 : vector<8x96xf32>
    %336 = arith.divf %334, %335 : vector<8x96xf32>
    %337 = vector.extract_strided_slice %336 {offsets = [0, 0], sizes = [8, 32], strides = [1, 1]} : vector<8x96xf32> to vector<8x32xf32>
    %338 = vector.extract_strided_slice %336 {offsets = [0, 32], sizes = [8, 32], strides = [1, 1]} : vector<8x96xf32> to vector<8x32xf32>
    %339 = vector.extract_strided_slice %336 {offsets = [0, 64], sizes = [8, 32], strides = [1, 1]} : vector<8x96xf32> to vector<8x32xf32>
    %340 = vector.extract_strided_slice %330 {offsets = [0, 96], sizes = [8, 32], strides = [1, 1]} : vector<8x128xf32> to vector<8x32xf32>
    %341 = math.tanh %340 : vector<8x32xf32>
    %342 = arith.mulf %338, %297 : vector<8x32xf32>
    %343 = arith.mulf %337, %341 : vector<8x32xf32>
    %344 = arith.addf %342, %343 : vector<8x32xf32>
    %345 = math.tanh %344 : vector<8x32xf32>
    %346 = arith.mulf %339, %345 : vector<8x32xf32>
    %cst_98 = arith.constant dense<0.000000e+00> : vector<8x128xf32>
    %347 = tpu.matmul %299, %14, %cst_98 {dimension_numbers = #tpu.dot_dimension_numbers<[1], [0], [0], [1], [0, 0, 1, 1], [], []>} : vector<8x32xf32>, vector<32x128xf32>, vector<8x128xf32> -> vector<8x128xf32>
    %cst_99 = arith.constant dense<0.000000e+00> : vector<8x128xf32>
    %348 = tpu.matmul %320, %13, %cst_99 {dimension_numbers = #tpu.dot_dimension_numbers<[1], [0], [0], [1], [0, 0, 1, 1], [], []>} : vector<8x32xf32>, vector<32x128xf32>, vector<8x128xf32> -> vector<8x128xf32>
    %349 = arith.addf %347, %348 : vector<8x128xf32>
    %350 = vector.broadcast %15 : vector<1x128xf32> to vector<8x128xf32>
    %351 = arith.addf %349, %350 : vector<8x128xf32>
    %352 = vector.extract_strided_slice %351 {offsets = [0, 0], sizes = [8, 96], strides = [1, 1]} : vector<8x128xf32> to vector<8x96xf32>
    %353 = arith.negf %352 : vector<8x96xf32>
    %354 = math.exp %353 : vector<8x96xf32>
    %cst_100 = arith.constant 1.000000e+00 : f32
    %355 = vector.broadcast %cst_100 : f32 to vector<8x96xf32>
    %356 = arith.addf %355, %354 : vector<8x96xf32>
    %357 = arith.divf %355, %356 : vector<8x96xf32>
    %358 = vector.extract_strided_slice %357 {offsets = [0, 0], sizes = [8, 32], strides = [1, 1]} : vector<8x96xf32> to vector<8x32xf32>
    %359 = vector.extract_strided_slice %357 {offsets = [0, 32], sizes = [8, 32], strides = [1, 1]} : vector<8x96xf32> to vector<8x32xf32>
    %360 = vector.extract_strided_slice %357 {offsets = [0, 64], sizes = [8, 32], strides = [1, 1]} : vector<8x96xf32> to vector<8x32xf32>
    %361 = vector.extract_strided_slice %351 {offsets = [0, 96], sizes = [8, 32], strides = [1, 1]} : vector<8x128xf32> to vector<8x32xf32>
    %362 = math.tanh %361 : vector<8x32xf32>
    %363 = arith.mulf %359, %318 : vector<8x32xf32>
    %364 = arith.mulf %358, %362 : vector<8x32xf32>
    %365 = arith.addf %363, %364 : vector<8x32xf32>
    %366 = math.tanh %365 : vector<8x32xf32>
    %367 = arith.mulf %360, %366 : vector<8x32xf32>
    %c1_i32_101 = arith.constant 1 : i32
    %368 = arith.subi %c7_i32, %c1_i32_101 : i32
    %369 = arith.index_cast %368 : i32 to index
    %c0_102 = arith.constant 0 : index
    %c0_103 = arith.constant 0 : index
    %370 = vector.load %arg16[%369, %c0_102, %c0_103] : memref<8x8x32xf32, #tpu.memory_space<vmem>>, vector<1x8x32xf32>
    %371 = vector.shape_cast %370 : vector<1x8x32xf32> to vector<8x32xf32>
    %372 = vector.shape_cast %367 : vector<8x32xf32> to vector<1x8x32xf32>
    tpu.vector_store %arg16[%369, %c0_102, %c0_103], %372 {strides = array<i32>} : memref<8x8x32xf32, #tpu.memory_space<vmem>>, vector<1x8x32xf32>,
    %c7_i32_104 = arith.constant 7 : i32
    %cst_105 = arith.constant dense<0.000000e+00> : vector<8x128xf32>
    %373 = tpu.matmul %346, %14, %cst_105 {dimension_numbers = #tpu.dot_dimension_numbers<[1], [0], [0], [1], [0, 0, 1, 1], [], []>} : vector<8x32xf32>, vector<32x128xf32>, vector<8x128xf32> -> vector<8x128xf32>
    %cst_106 = arith.constant dense<0.000000e+00> : vector<8x128xf32>
    %374 = tpu.matmul %367, %13, %cst_106 {dimension_numbers = #tpu.dot_dimension_numbers<[1], [0], [0], [1], [0, 0, 1, 1], [], []>} : vector<8x32xf32>, vector<32x128xf32>, vector<8x128xf32> -> vector<8x128xf32>
    %375 = arith.addf %373, %374 : vector<8x128xf32>
    %376 = vector.broadcast %15 : vector<1x128xf32> to vector<8x128xf32>
    %377 = arith.addf %375, %376 : vector<8x128xf32>
    %378 = vector.extract_strided_slice %377 {offsets = [0, 0], sizes = [8, 96], strides = [1, 1]} : vector<8x128xf32> to vector<8x96xf32>
    %379 = arith.negf %378 : vector<8x96xf32>
    %380 = math.exp %379 : vector<8x96xf32>
    %cst_107 = arith.constant 1.000000e+00 : f32
    %381 = vector.broadcast %cst_107 : f32 to vector<8x96xf32>
    %382 = arith.addf %381, %380 : vector<8x96xf32>
    %383 = arith.divf %381, %382 : vector<8x96xf32>
    %384 = vector.extract_strided_slice %383 {offsets = [0, 0], sizes = [8, 32], strides = [1, 1]} : vector<8x96xf32> to vector<8x32xf32>
    %385 = vector.extract_strided_slice %383 {offsets = [0, 32], sizes = [8, 32], strides = [1, 1]} : vector<8x96xf32> to vector<8x32xf32>
    %386 = vector.extract_strided_slice %383 {offsets = [0, 64], sizes = [8, 32], strides = [1, 1]} : vector<8x96xf32> to vector<8x32xf32>
    %387 = vector.extract_strided_slice %377 {offsets = [0, 96], sizes = [8, 32], strides = [1, 1]} : vector<8x128xf32> to vector<8x32xf32>
    %388 = math.tanh %387 : vector<8x32xf32>
    %389 = arith.mulf %385, %365 : vector<8x32xf32>
    %390 = arith.mulf %384, %388 : vector<8x32xf32>
    %391 = arith.addf %389, %390 : vector<8x32xf32>
    %392 = math.tanh %391 : vector<8x32xf32>
    %393 = arith.mulf %386, %392 : vector<8x32xf32>
    %c7 = arith.constant 7 : index
    %c0_108 = arith.constant 0 : index
    %c0_109 = arith.constant 0 : index
    %394 = vector.load %arg16[%c7, %c0_108, %c0_109] : memref<8x8x32xf32, #tpu.memory_space<vmem>>, vector<1x8x32xf32>
    %395 = vector.shape_cast %394 : vector<1x8x32xf32> to vector<8x32xf32>
    %396 = vector.shape_cast %393 : vector<8x32xf32> to vector<1x8x32xf32>
    tpu.vector_store %arg16[%c7, %c0_108, %c0_109], %396 {strides = array<i32>} : memref<8x8x32xf32, #tpu.memory_space<vmem>>, vector<1x8x32xf32>,
    %c0_110 = arith.constant 0 : index
    %c0_111 = arith.constant 0 : index
    %c0_112 = arith.constant 0 : index
    %397 = vector.load %arg13[%c0_110, %c0_111, %c0_112] : memref<2x8x32xf32, #tpu.memory_space<vmem>>, vector<1x8x32xf32>
    %398 = vector.shape_cast %397 : vector<1x8x32xf32> to vector<8x32xf32>
    %399 = vector.shape_cast %346 : vector<8x32xf32> to vector<1x8x32xf32>
    tpu.vector_store %arg13[%c0_110, %c0_111, %c0_112], %399 {strides = array<i32>} : memref<2x8x32xf32, #tpu.memory_space<vmem>>, vector<1x8x32xf32>,
    %c0_113 = arith.constant 0 : index
    %c0_114 = arith.constant 0 : index
    %c0_115 = arith.constant 0 : index
    %400 = vector.load %arg14[%c0_113, %c0_114, %c0_115] : memref<2x8x32xf32, #tpu.memory_space<vmem>>, vector<1x8x32xf32>
    %401 = vector.shape_cast %400 : vector<1x8x32xf32> to vector<8x32xf32>
    %402 = vector.shape_cast %344 : vector<8x32xf32> to vector<1x8x32xf32>
    tpu.vector_store %arg14[%c0_113, %c0_114, %c0_115], %402 {strides = array<i32>} : memref<2x8x32xf32, #tpu.memory_space<vmem>>, vector<1x8x32xf32>,
    %c1_116 = arith.constant 1 : index
    %c0_117 = arith.constant 0 : index
    %c0_118 = arith.constant 0 : index
    %403 = vector.load %arg13[%c1_116, %c0_117, %c0_118] : memref<2x8x32xf32, #tpu.memory_space<vmem>>, vector<1x8x32xf32>
    %404 = vector.shape_cast %403 : vector<1x8x32xf32> to vector<8x32xf32>
    %405 = vector.shape_cast %393 : vector<8x32xf32> to vector<1x8x32xf32>
    tpu.vector_store %arg13[%c1_116, %c0_117, %c0_118], %405 {strides = array<i32>} : memref<2x8x32xf32, #tpu.memory_space<vmem>>, vector<1x8x32xf32>,
    %c1_119 = arith.constant 1 : index
    %c0_120 = arith.constant 0 : index
    %c0_121 = arith.constant 0 : index
    %406 = vector.load %arg14[%c1_119, %c0_120, %c0_121] : memref<2x8x32xf32, #tpu.memory_space<vmem>>, vector<1x8x32xf32>
    %407 = vector.shape_cast %406 : vector<1x8x32xf32> to vector<8x32xf32>
    %408 = vector.shape_cast %391 : vector<8x32xf32> to vector<1x8x32xf32>
    tpu.vector_store %arg14[%c1_119, %c0_120, %c0_121], %408 {strides = array<i32>} : memref<2x8x32xf32, #tpu.memory_space<vmem>>, vector<1x8x32xf32>,
    %c0_122 = arith.constant 0 : index
    %c0_123 = arith.constant 0 : index
    %c0_124 = arith.constant 0 : index
    %409 = vector.load %arg16[%c0_122, %c0_123, %c0_124] : memref<8x8x32xf32, #tpu.memory_space<vmem>>, vector<8x8x32xf32>
    %410 = vector.shape_cast %409 : vector<8x8x32xf32> to vector<64x32xf32>
    %c0_125 = arith.constant 0 : index
    %c0_126 = arith.constant 0 : index
    %411 = vector.load %arg10[%c0_125, %c0_126] : memref<8x32xf32, #tpu.memory_space<vmem>>, vector<8x32xf32>
    %cst_127 = arith.constant dense<0.000000e+00> : vector<8x64xf32>
    %412 = tpu.matmul %411, %410, %cst_127 {dimension_numbers = #tpu.dot_dimension_numbers<[1], [1], [0], [0], [0, 0, 1, 0], [], []>} : vector<8x32xf32>, vector<64x32xf32>, vector<8x64xf32> -> vector<8x64xf32>
    %413 = vector.extract_strided_slice %412 {offsets = [0, 0], sizes = [1, 64], strides = [1, 1]} : vector<8x64xf32> to vector<1x64xf32>
    %c0_128 = arith.constant 0 : index
    %414 = memref.load %arg11[%c0_128] : memref<1xf32, #tpu.memory_space<smem>>
    %415 = vector.broadcast %414 : f32 to vector<1x64xf32>
    %416 = arith.addf %413, %415 : vector<1x64xf32>
    %417 = vector.shape_cast %416 : vector<1x64xf32> to vector<1x1x64xf32>
    %c0_129 = arith.constant 0 : index
    %c0_130 = arith.constant 0 : index
    %c0_131 = arith.constant 0 : index
    %418 = vector.load %arg12[%c0_129, %c0_130, %c0_131] : memref<1x1x64xf32, #tpu.memory_space<vmem>>, vector<1x1x64xf32>
    tpu.vector_store %arg12[%c0_129, %c0_130, %c0_131], %417 {strides = array<i32>} : memref<1x1x64xf32, #tpu.memory_space<vmem>>, vector<1x1x64xf32>,
    return
  }
  func.func @transform_0(%arg0: i32) -> (i32, i32, i32) {
    %c0_i32 = arith.constant 0 : i32
    %c0_i32_0 = arith.constant 0 : i32
    %c0_i32_1 = arith.constant 0 : i32
    return %arg0, %c0_i32, %c0_i32_0 : i32, i32, i32
  }
  func.func @transform_1(%arg0: i32) -> (i32, i32) {
    %c0_i32 = arith.constant 0 : i32
    %c0_i32_0 = arith.constant 0 : i32
    %c0_i32_1 = arith.constant 0 : i32
    return %c0_i32, %c0_i32_0 : i32, i32
  }
  func.func @transform_2(%arg0: i32) -> (i32, i32) {
    %c0_i32 = arith.constant 0 : i32
    %c0_i32_0 = arith.constant 0 : i32
    %c0_i32_1 = arith.constant 0 : i32
    return %c0_i32, %c0_i32_0 : i32, i32
  }
  func.func @transform_3(%arg0: i32) -> (i32, i32) {
    %c0_i32 = arith.constant 0 : i32
    %c0_i32_0 = arith.constant 0 : i32
    %c0_i32_1 = arith.constant 0 : i32
    return %c0_i32, %c0_i32_0 : i32, i32
  }
  func.func @transform_4(%arg0: i32) -> (i32, i32) {
    %c0_i32 = arith.constant 0 : i32
    %c0_i32_0 = arith.constant 0 : i32
    %c0_i32_1 = arith.constant 0 : i32
    return %c0_i32, %c0_i32_0 : i32, i32
  }
  func.func @transform_5(%arg0: i32) -> (i32, i32) {
    %c0_i32 = arith.constant 0 : i32
    %c0_i32_0 = arith.constant 0 : i32
    %c0_i32_1 = arith.constant 0 : i32
    return %c0_i32, %c0_i32_0 : i32, i32
  }
  func.func @transform_6(%arg0: i32) -> (i32, i32) {
    %c0_i32 = arith.constant 0 : i32
    %c0_i32_0 = arith.constant 0 : i32
    %c0_i32_1 = arith.constant 0 : i32
    return %c0_i32, %c0_i32_0 : i32, i32
  }
  func.func @transform_7(%arg0: i32) -> (i32, i32, i32) {
    %c0_i32 = arith.constant 0 : i32
    %c0_i32_0 = arith.constant 0 : i32
    %c0_i32_1 = arith.constant 0 : i32
    %c0_i32_2 = arith.constant 0 : i32
    return %c0_i32, %c0_i32_0, %c0_i32_1 : i32, i32, i32
  }
  func.func @transform_8(%arg0: i32) -> (i32, i32, i32) {
    %c0_i32 = arith.constant 0 : i32
    %c0_i32_0 = arith.constant 0 : i32
    %c0_i32_1 = arith.constant 0 : i32
    %c0_i32_2 = arith.constant 0 : i32
    return %c0_i32, %c0_i32_0, %c0_i32_1 : i32, i32, i32
  }
  func.func @transform_9(%arg0: i32) -> (i32, i32) {
    %c0_i32 = arith.constant 0 : i32
    %c0_i32_0 = arith.constant 0 : i32
    %c0_i32_1 = arith.constant 0 : i32
    return %c0_i32, %c0_i32_0 : i32, i32
  }
  func.func @transform_10(%arg0: i32) -> i32 {
    %c0_i32 = arith.constant 0 : i32
    %c0_i32_0 = arith.constant 0 : i32
    return %c0_i32 : i32
  }
  func.func @transform_11(%arg0: i32) -> (i32, i32, i32) {
    %c0_i32 = arith.constant 0 : i32
    %c0_i32_0 = arith.constant 0 : i32
    %c0_i32_1 = arith.constant 0 : i32
    return %arg0, %c0_i32, %c0_i32_0 : i32, i32, i32
  }
}

</mosaic_0001>

<bundles_post_ra>
// kernel: lstm_model_forward.1
= control target key start
LH: loop header
LB: loop body
LE: loop exit
PB: predicated region body
PF: predicated region fallthrough
CT: control target
= control target key end

     0   :  { %vm90_vm0 = vcmask 1043456   ;;  %vm65_vm1 = vcmask 31744   ;;  %vm45_vm2 = vcmask 261120   ;;  %s1663_s14 = smov 32   ;;  %s1664_s30 = smov 64   ;;  %s2157_s2 = inlined_call_operand.vmem [shape: f32[32,128], index: 2, kind: input, shape index: {}]   ;;  %s2158_s1 = inlined_call_operand.vmem [shape: f32[4,128], index: 1, kind: input, shape index: {}]   ;;  %s2159_s0 = inlined_call_operand.vmem [shape: f32[8,8,4], index: 0, kind: input, shape index: {}]   ;;  %s2160_s7 = inlined_call_operand.vmem [shape: f32[2,8,32], index: 7, kind: input, shape index: {}]   ;;  %s2161_s3 = inlined_call_operand.vmem [shape: f32[1,128], index: 3, kind: input, shape index: {}]   ;;  %s2162_s8 = inlined_call_operand.vmem [shape: f32[2,8,32], index: 8, kind: input, shape index: {}]   ;;  %s2163_s5 = inlined_call_operand.vmem [shape: f32[32,128], index: 5, kind: input, shape index: {}]   ;;  %s2164_s4 = inlined_call_operand.vmem [shape: f32[32,128], index: 4, kind: input, shape index: {}]   ;;  %s2165_s6 = inlined_call_operand.vmem [shape: f32[1,128], index: 6, kind: input, shape index: {}]   ;;  %s2166_s9 = inlined_call_operand.vmem [shape: f32[8,32], index: 9, kind: input, shape index: {}]   ;;  %s2167_s10 = inlined_call_operand.<no memory space> [shape: f32[1], index: 10, kind: input, shape index: {}]   ;;  %s2168_s11 = inlined_call_operand.vmem [shape: f32[1,1,64], index: 11, kind: output, shape index: {}]  }
   0x1   :  { %v1729_v0 = vld [vmem:[%s2157_s2 + $0x18] sm:$0xff]  ;;  %v1734_v1 = vld [vmem:[%s2157_s2 + $0x10] sm:$0xff]  ;;  %v60_v2 = vld [vmem:[%s2158_s1] sm:$0xf] }
   0x2   :  { %179 = vmatpush.msra.mxu1 %v1729_v0  ;;  %1462 = vmatpush.msk.msra.mxu0 %vm90_vm0, %v60_v2  ;;  %v52_v3 = vld [vmem:[%s2159_s0] sm:$0xff]  ;;  %v1746_v4 = vld [vmem:[%s2157_s2 + $0x8] sm:$0xff]  ;;  %v1790_v36 = vld [vmem:[%s2163_s5 + $0x18] sm:$0xff] }
   0x3   :  { %1463 = vmatmul.msk.f32.vlgmr.msra.gmra.mxu0 %vm65_vm1, %v52_v3  ;;  %v43_v5 = vld [vmem:[%s2160_s7] sm:$0xff]  ;;  %248 = vmatpush.msra.mxu2 %v1729_v0  ;;  %v1795_v37 = vld [vmem:[%s2163_s5 + $0x10] sm:$0xff]  ;;  %v1801_v38 = vld [vmem:[%s2164_s4 + $0x18] sm:$0xff] }
   0x4   :  { %180 = vmatpush.msra.mxu1 %v1734_v1  ;;  %46 = vst.msk [vmem:[#allocation2] sm:$0xff] %vm45_vm2, %v43_v5  ;;  %v1758_v6 = vld [vmem:[%s2157_s2] sm:$0xff]  ;;  %309 = vmatpush.msra.mxu3 %v1790_v36  ;;  %v44_v39 = vld [vmem:[%s2160_s7 + $0x8] sm:$0xff]  ;;  %v1816_v41 = vld [vmem:[%s2164_s4 + $0x10] sm:$0xff] }
   0x5   :  { %249 = vmatpush.msra.mxu2 %v1734_v1  ;;  %v48_v8 = vld [vmem:[%s2162_s8] sm:$0xff]  ;;  %v1809_v40 = vld [vmem:[%s2163_s5 + $0x8] sm:$0xff]  ;;  %47 = vst.msk [vmem:[#allocation2 + $0x8] sm:$0xff] %vm45_vm2, %v44_v39 }
   0x6   :  { %181 = vmatpush.msra.mxu1 %v1746_v4  ;;  %50 = vst.msk [vmem:[#allocation3] sm:$0xff] %vm45_vm2, %v48_v8  ;;  %v1777_v9 = vld [vmem:[%s2161_s3] ss:$0 sm:$0xff]  ;;  %310 = vmatpush.msra.mxu3 %v1795_v37  ;;  %v1822_v42 = vld [vmem:[%s2164_s4 + $0x8] sm:$0xff] }
   0x7   :  { %250 = vmatpush.msra.mxu2 %v1746_v4  ;;  %v1827_v43 = vld [vmem:[%s2163_s5] sm:$0xff]  ;;  %v53_v48 = vld [vmem:[%s2159_s0 + $0x8] sm:$0xff] }
   0x8   :  { %182 = vmatpush.msra.mxu1 %v1758_v6  ;;  %311 = vmatpush.msra.mxu3 %v1809_v40  ;;  %v1834_v44 = vld [vmem:[%s2164_s4] sm:$0xff]  ;;  %v49_v49 = vld [vmem:[%s2162_s8 + $0x8] sm:$0xff] }
   0x9   :  { %251 = vmatpush.msra.mxu2 %v1758_v6  ;;  %51 = vst.msk [vmem:[#allocation3 + $0x8] sm:$0xff] %vm45_vm2, %v49_v49  ;;  %v1875_v53 = vld [vmem:[%s2165_s6] ss:$0 sm:$0xff] }
   0xa   :  { %329 = vmatpush.msrb.mxu1 %v1801_v38  ;;  %312 = vmatpush.msra.mxu3 %v1827_v43 }
   0xb   :  { %406 = vmatpush.msrb.mxu2 %v1729_v0  ;;  %v156_v7 = vld [vmem:[#allocation2] sm:$0xff]  ;;  %1464 = vmatmul.msk.f32.gmra.mxu0 %vm65_vm1, %v53_v48 }
   0xc   :  { %1471 = vmatmul.msk.f32.vlgmr.msra.gmra.mxu1 %vm45_vm2, %v156_v7  ;;  %466 = vmatpush.msrb.mxu3 %v1790_v36  ;;  %v158_v45 = vld [vmem:[#allocation2 + $0x8] sm:$0xff] }
   0xd   :  { %407 = vmatpush.msrb.mxu2 %v1734_v1  ;;  %v159_v15 = vld [vmem:[#allocation3] sm:$0xff]  ;;  %330 = vmatpush.msrb.mxu1 %v1816_v41 }
   0xe   :  { %1475 = vmatmul.msk.f32.vlgmr.msra.gmra.mxu3 %vm45_vm2, %v158_v45 }
   0xf   :  { %408 = vmatpush.msrb.mxu2 %v1746_v4  ;;  %331 = vmatpush.msrb.mxu1 %v1822_v42 }
  0x10   :  { %467 = vmatpush.msrb.mxu3 %v1795_v37  ;;  %v161_v50 = vld [vmem:[#allocation3 + $0x8] sm:$0xff] }
  0x11   :  { %409 = vmatpush.msrb.mxu2 %v1758_v6  ;;  %332 = vmatpush.msrb.mxu1 %v1834_v44 }
  0x12   :  { %468 = vmatpush.msrb.mxu3 %v1809_v40 }
  0x13   :  { %486 = vmatpush.msra.mxu1 %v1801_v38 }
  0x14   :  { %469 = vmatpush.msrb.mxu3 %v1827_v43 }
  0x15   :  { %487 = vmatpush.msra.mxu1 %v1816_v41 }
  0x16   :  { %617 = vmatpush.msra.mxu3 %v1790_v36 }
  0x17   :  { %488 = vmatpush.msra.mxu1 %v1822_v42 }
  0x18   :  { %618 = vmatpush.msra.mxu3 %v1795_v37 }
  0x19   :  { %489 = vmatpush.msra.mxu1 %v1834_v44 }
  0x1a   :  { %619 = vmatpush.msra.mxu3 %v1809_v40 }
  0x1c   :  { %620 = vmatpush.msra.mxu3 %v1827_v43 }
  0x80   :  { %v111_v10 = vpop.f32.mrf.mxu0 }
  0x81   :  { %v112_v11 = vadd.f32 %v1777_v9, %v111_v10 }
  0x88   :  { %v114_v55 = vpop.f32.mrf.mxu0 }
  0x89   :  { %v184_v12 = vpop.f32.mrf.mxu1  ;;  %v115_v58 = vadd.f32 %v1777_v9, %v114_v55 }
  0x8a   :  { %v187_v13 = vadd.f32 %v184_v12, %v112_v11 }
  0x8c   :  { %1525 = vtanh.f32 %v187_v13  ;;  %v1472_v16 = vmul.f32 -1.442695, %v187_v13 }
  0x8e   :  { %1527 = vpow2.f32 %v1472_v16 }
  0x91   :  { %v314_v52 = vpop.f32.mrf.mxu3 }
  0x92   :  { %v1526_v14 = vpop.eup %1525 }
  0x93   :  { %214 = vrot.lane.b32.xlu0 %v1526_v14, %s1663_s14 }
  0x94   :  { %v1528_v17 = vpop.eup %1527 }
  0x95   :  { %v191_v18 = vadd.f32 1.0, %v1528_v17 }
  0x97   :  { %1529 = vrcp.f32 %v191_v18  ;;  %v203_v24 = vand.u32 2147483648, %v191_v18  ;;  %vm197_vm4 = vweird.f32 %v191_v18  ;;  %v201_v25 = vand.u32 2147483647, %v191_v18 }
  0x99   :  { %v204_v27 = vor.u32 1.1754944e-38, %v203_v24  ;;  %vm202_vm6 = vcmp.eq.f32.partialorder %v201_v25, 8.507059e+37 }
  0x9b   :  { %209 = vrot.lane.b32.xlu0 %v159_v15, %s1663_s14 }
  0x9d   :  { %v1530_v19 = vpop.eup %1529 }
  0x9e   :  { %v193_v20 = vmul.f32 %v1530_v19, %v191_v18  ;;  %vm198_vm3 = vweird.f32 %v1530_v19 }
  0x9f   :  { %vm199_vm5 = vmor %vm197_vm4, %vm198_vm3 }
  0xa0   :  { %v194_v21 = vsub.f32 1.0, %v193_v20 }
  0xa2   :  { %v195_v22 = vmul.f32 %v1530_v19, %v194_v21 }
  0xa4   :  { %v196_v23 = vadd.f32 %v1530_v19, %v195_v22 }
  0xa6   :  { %v200_v26 = vsel %vm199_vm5, %v1530_v19, %v196_v23 }
  0xa7   :  { %v205_v29 = vsel %vm202_vm6, %v204_v27, %v200_v26 }
 0x105   :  { %v215_v28 = vpop.permute.xlu0 %214 }
 0x106   :  { %v217_v30 = vmul.f32 %v215_v28, %v205_v29 }
 0x108   :  { %219 = vrot.lane.b32.xlu1 %v217_v30, %s1663_s14 }
 0x10d   :  { %v210_v31 = vpop.permute.xlu0 %209 }
 0x10e   :  { %v212_v32 = vmul.f32 %v210_v31, %v205_v29 }
 0x17a   :  { %v220_v33 = vpop.permute.xlu1 %219 }
 0x17b   :  { %v1783_v34 = vadd.f32 %v220_v33, %v212_v32 }
 0x17d   :  { %1531 = vtanh.f32 %v1783_v34 }
 0x183   :  { %v1532_v35 = vpop.eup %1531 }
 0x184   :  { %225 = vrot.lane.b32.xlu1 %v1532_v35, %s1663_s14 }
 0x18c   :  { %362 = vrot.lane.b32.xlu1 %v161_v50, %s1663_s14 }
 0x1f6   :  { %v226_v46 = vpop.permute.xlu1 %225 }
 0x1f7   :  { %v228_v47 = vmul.f32 %v226_v46, %v205_v29 }
 0x1f9   :  { %232 = vrot.lane.b32.xlu2 %v228_v47, %s1664_s30 }
 0x1fe   :  { %v363_v35 = vpop.permute.xlu1 %362 }
 0x253   :  { %v233_v51 = vpop.permute.xlu2 %232 }
 0x254   :  { %1473 = vmatmul.msk.f32.vlgmr.msra.gmra.mxu2 %vm45_vm2, %v233_v51  ;;  %1476 = vmatmul.msk.f32.vlgmr.msrb.gmra.mxu1 %vm45_vm2, %v233_v51 }
 0x255   :  { %557 = vmatpush.msra.mxu2 %v1729_v0  ;;  %637 = vmatpush.msrb.mxu1 %v1801_v38 }
 0x257   :  { %558 = vmatpush.msra.mxu2 %v1734_v1  ;;  %638 = vmatpush.msrb.mxu1 %v1816_v41 }
 0x259   :  { %559 = vmatpush.msra.mxu2 %v1746_v4  ;;  %639 = vmatpush.msrb.mxu1 %v1822_v42 }
 0x25b   :  { %560 = vmatpush.msra.mxu2 %v1758_v6  ;;  %640 = vmatpush.msrb.mxu1 %v1834_v44 }
 0x2d1   :  { %v334_v54 = vpop.f32.mrf.mxu1 }
 0x2d2   :  { %v335_v56 = vadd.f32 %v334_v54, %v314_v52 }
 0x2d4   :  { %v340_v57 = vadd.f32 %v1875_v53, %v335_v56 }
 0x2d6   :  { %1533 = vtanh.f32 %v340_v57  ;;  %v1477_v63 = vmul.f32 -1.442695, %v340_v57 }
 0x2d7   :  { %v253_v59 = vpop.f32.mrf.mxu2 }
 0x2d8   :  { %v256_v60 = vadd.f32 %v253_v59, %v115_v58 }
 0x2da   :  { %1535 = vtanh.f32 %v256_v60  ;;  %v1474_v8 = vmul.f32 -1.442695, %v256_v60 }
 0x2db   :  { %1537 = vpow2.f32 %v1477_v63 }
 0x2dc   :  { %v1534_v61 = vpop.eup %1533 }
 0x2dd   :  { %367 = vrot.lane.b32.xlu2 %v1534_v61, %s1663_s14 }
 0x2e0   :  { %v1536_v62 = vpop.eup %1535 }
 0x2e1   :  { %279 = vrot.lane.b32.xlu0 %v1536_v62, %s1663_s14  ;;  %v1538_v2 = vpop.eup %1537 }
 0x2e2   :  { %v344_v3 = vadd.f32 1.0, %v1538_v2 }
 0x2e4   :  { %1539 = vrcp.f32 %v344_v3  ;;  %v356_v14 = vand.u32 2147483648, %v344_v3  ;;  %vm350_vm8 = vweird.f32 %v344_v3  ;;  %v354_v15 = vand.u32 2147483647, %v344_v3 }
 0x2e5   :  { %1541 = vpow2.f32 %v1474_v8 }
 0x2e6   :  { %v357_v18 = vor.u32 1.1754944e-38, %v356_v14  ;;  %vm355_vm10 = vcmp.eq.f32.partialorder %v354_v15, 8.507059e+37 }
 0x2ea   :  { %v1540_v5 = vpop.eup %1539 }
 0x2eb   :  { %v346_v7 = vmul.f32 %v1540_v5, %v344_v3  ;;  %v1542_v12 = vpop.eup %1541  ;;  %vm351_vm7 = vweird.f32 %v1540_v5 }
 0x2ec   :  { %v260_v16 = vadd.f32 1.0, %v1542_v12  ;;  %vm352_vm9 = vmor %vm350_vm8, %vm351_vm7 }
 0x2ed   :  { %v347_v10 = vsub.f32 1.0, %v346_v7 }
 0x2ee   :  { %1543 = vrcp.f32 %v260_v16  ;;  %v272_v27 = vand.u32 2147483648, %v260_v16  ;;  %vm266_vm12 = vweird.f32 %v260_v16  ;;  %v270_v28 = vand.u32 2147483647, %v260_v16 }
 0x2ef   :  { %v348_v11 = vmul.f32 %v1540_v5, %v347_v10 }
 0x2f0   :  { %v273_v30 = vor.u32 1.1754944e-38, %v272_v27  ;;  %vm271_vm14 = vcmp.eq.f32.partialorder %v270_v28, 8.507059e+37 }
 0x2f1   :  { %v349_v13 = vadd.f32 %v1540_v5, %v348_v11 }
 0x2f3   :  { %v353_v17 = vsel %vm352_vm9, %v1540_v5, %v349_v13 }
 0x2f4   :  { %v358_v19 = vsel %vm355_vm10, %v357_v18, %v353_v17  ;;  %v1544_v22 = vpop.eup %1543 }
 0x2f5   :  { %v262_v23 = vmul.f32 %v1544_v22, %v260_v16  ;;  %vm267_vm11 = vweird.f32 %v1544_v22  ;;  %v365_v39 = vmul.f32 %v363_v35, %v358_v19 }
 0x2f6   :  { %vm268_vm13 = vmor %vm266_vm12, %vm267_vm11 }
 0x2f7   :  { %v263_v24 = vsub.f32 1.0, %v262_v23 }
 0x2f9   :  { %v264_v25 = vmul.f32 %v1544_v22, %v263_v24 }
 0x2fb   :  { %v265_v26 = vadd.f32 %v1544_v22, %v264_v25 }
 0x2fd   :  { %v269_v29 = vsel %vm268_vm13, %v1544_v22, %v265_v26 }
 0x2fe   :  { %v274_v32 = vsel %vm271_vm14, %v273_v30, %v269_v29 }
 0x2ff   :  { %v277_v48 = vmul.f32 %v274_v32, %v1783_v34  ;;  %v54_v34 = vld [vmem:[%s2159_s0 + $0x10] sm:$0xff] }
 0x300   :  { %1465 = vmatmul.msk.f32.gmra.mxu0 %vm65_vm1, %v54_v34 }
 0x337   :  { %v368_v20 = vpop.permute.xlu2 %367 }
 0x338   :  { %v370_v21 = vmul.f32 %v368_v20, %v358_v19 }
 0x33a   :  { %372 = vrot.lane.b32.xlu2 %v370_v21, %s1663_s14 }
 0x353   :  { %v280_v31 = vpop.permute.xlu0 %279 }
 0x354   :  { %v282_v33 = vmul.f32 %v280_v31, %v274_v32 }
 0x356   :  { %284 = vrot.lane.b32.xlu0 %v282_v33, %s1663_s14 }
 0x37d   :  { %v117_v59 = vpop.f32.mrf.mxu0 }
 0x37e   :  { %v118_v2 = vadd.f32 %v1777_v9, %v117_v59 }
 0x394   :  { %v373_v45 = vpop.permute.xlu2 %372 }
 0x395   :  { %v1883_v46 = vadd.f32 %v373_v45, %v365_v39 }
 0x397   :  { %1545 = vtanh.f32 %v1883_v46 }
 0x39d   :  { %v1546_v47 = vpop.eup %1545 }
 0x39e   :  { %378 = vrot.lane.b32.xlu1 %v1546_v47, %s1663_s14 }
 0x3c8   :  { %v285_v49 = vpop.permute.xlu0 %284 }
 0x3c9   :  { %v1888_v50 = vadd.f32 %v285_v49, %v277_v48 }
 0x3cb   :  { %1547 = vtanh.f32 %v1888_v50 }
 0x3d1   :  { %v1548_v51 = vpop.eup %1547 }
 0x3d2   :  { %290 = vrot.lane.b32.xlu2 %v1548_v51, %s1663_s14 }
 0x410   :  { %v379_v52 = vpop.permute.xlu1 %378 }
 0x411   :  { %v381_v54 = vmul.f32 %v379_v52, %v358_v19 }
 0x413   :  { %383 = vrot.lane.b32.xlu0 %v381_v54, %s1664_s30 }
 0x42c   :  { %v291_v55 = vpop.permute.xlu2 %290 }
 0x42d   :  { %v293_v56 = vmul.f32 %v291_v55, %v274_v32 }
 0x42f   :  { %390 = vrot.lane.b32.xlu1 %v293_v56, %s1664_s30 }
 0x485   :  { %v384_v57 = vpop.permute.xlu0 %383 }
 0x486   :  { %386 = vst.msk [vmem:[#allocation5] sm:$0xff] %vm45_vm2, %v384_v57  ;;  %1480 = vmatmul.msk.f32.vlgmr.msrb.gmra.mxu3 %vm45_vm2, %v384_v57 }
 0x487   :  { %768 = vmatpush.msrb.mxu3 %v1790_v36 }
 0x489   :  { %769 = vmatpush.msrb.mxu3 %v1795_v37 }
 0x48b   :  { %770 = vmatpush.msrb.mxu3 %v1809_v40 }
 0x48d   :  { %771 = vmatpush.msrb.mxu3 %v1827_v43 }
 0x4a1   :  { %v391_v58 = vpop.permute.xlu1 %390 }
 0x4a2   :  { %1478 = vmatmul.msk.f32.vlgmr.msrb.gmra.mxu2 %vm45_vm2, %v391_v58  ;;  %1481 = vmatmul.msk.f32.vlgmr.msra.gmra.mxu1 %vm45_vm2, %v391_v58 }
 0x4a3   :  { %708 = vmatpush.msrb.mxu2 %v1729_v0  ;;  %788 = vmatpush.msra.mxu1 %v1801_v38 }
 0x4a5   :  { %709 = vmatpush.msrb.mxu2 %v1734_v1  ;;  %789 = vmatpush.msra.mxu1 %v1816_v41 }
 0x4a7   :  { %710 = vmatpush.msrb.mxu2 %v1746_v4  ;;  %790 = vmatpush.msra.mxu1 %v1822_v42 }
 0x4a9   :  { %711 = vmatpush.msrb.mxu2 %v1758_v6  ;;  %791 = vmatpush.msra.mxu1 %v1834_v44 }
 0x509   :  { %v471_v60 = vpop.f32.mrf.mxu3 }
 0x51f   :  { %v491_v61 = vpop.f32.mrf.mxu1 }
 0x520   :  { %v492_v62 = vadd.f32 %v491_v61, %v471_v60 }
 0x522   :  { %v494_v63 = vadd.f32 %v1875_v53, %v492_v62 }
 0x524   :  { %1549 = vtanh.f32 %v494_v63  ;;  %v1482_v10 = vmul.f32 -1.442695, %v494_v63 }
 0x525   :  { %v411_v3 = vpop.f32.mrf.mxu2 }
 0x526   :  { %v414_v5 = vadd.f32 %v411_v3, %v118_v2 }
 0x528   :  { %1551 = vtanh.f32 %v414_v5  ;;  %v1479_v15 = vmul.f32 -1.442695, %v414_v5 }
 0x529   :  { %1553 = vpow2.f32 %v1482_v10 }
 0x52a   :  { %v1550_v7 = vpop.eup %1549 }
 0x52b   :  { %517 = vrot.lane.b32.xlu2 %v1550_v7, %s1663_s14 }
 0x52e   :  { %v1552_v8 = vpop.eup %1551 }
 0x52f   :  { %437 = vrot.lane.b32.xlu0 %v1552_v8, %s1663_s14  ;;  %v1554_v11 = vpop.eup %1553 }
 0x530   :  { %v498_v12 = vadd.f32 1.0, %v1554_v11 }
 0x532   :  { %1555 = vrcp.f32 %v498_v12  ;;  %v510_v20 = vand.u32 2147483648, %v498_v12  ;;  %vm504_vm0 = vweird.f32 %v498_v12  ;;  %v508_v21 = vand.u32 2147483647, %v498_v12 }
 0x533   :  { %1557 = vpow2.f32 %v1479_v15 }
 0x534   :  { %v511_v24 = vor.u32 1.1754944e-38, %v510_v20  ;;  %vm509_vm4 = vcmp.eq.f32.partialorder %v508_v21, 8.507059e+37 }
 0x538   :  { %v1556_v13 = vpop.eup %1555 }
 0x539   :  { %v500_v14 = vmul.f32 %v1556_v13, %v498_v12  ;;  %v1558_v18 = vpop.eup %1557  ;;  %vm505_vm15 = vweird.f32 %v1556_v13 }
 0x53a   :  { %v418_v22 = vadd.f32 1.0, %v1558_v18  ;;  %vm506_vm3 = vmor %vm504_vm0, %vm505_vm15 }
 0x53b   :  { %v501_v16 = vsub.f32 1.0, %v500_v14 }
 0x53c   :  { %1559 = vrcp.f32 %v418_v22  ;;  %v430_v33 = vand.u32 2147483648, %v418_v22  ;;  %vm424_vm6 = vweird.f32 %v418_v22  ;;  %v428_v35 = vand.u32 2147483647, %v418_v22 }
 0x53d   :  { %v502_v17 = vmul.f32 %v1556_v13, %v501_v16 }
 0x53e   :  { %v431_v45 = vor.u32 1.1754944e-38, %v430_v33  ;;  %vm429_vm8 = vcmp.eq.f32.partialorder %v428_v35, 8.507059e+37 }
 0x53f   :  { %v503_v19 = vadd.f32 %v1556_v13, %v502_v17 }
 0x541   :  { %v507_v23 = vsel %vm506_vm3, %v1556_v13, %v503_v19 }
 0x542   :  { %v512_v26 = vsel %vm509_vm4, %v511_v24, %v507_v23  ;;  %v1560_v28 = vpop.eup %1559 }
 0x543   :  { %v420_v29 = vmul.f32 %v1560_v28, %v418_v22  ;;  %vm425_vm5 = vweird.f32 %v1560_v28  ;;  %v515_v51 = vmul.f32 %v512_v26, %v1883_v46 }
 0x544   :  { %vm426_vm7 = vmor %vm424_vm6, %vm425_vm5 }
 0x545   :  { %v421_v30 = vsub.f32 1.0, %v420_v29 }
 0x547   :  { %v422_v31 = vmul.f32 %v1560_v28, %v421_v30 }
 0x549   :  { %v423_v32 = vadd.f32 %v1560_v28, %v422_v31 }
 0x54b   :  { %v427_v39 = vsel %vm426_vm7, %v1560_v28, %v423_v32 }
 0x54c   :  { %v432_v48 = vsel %vm429_vm8, %v431_v45, %v427_v39 }
 0x54d   :  { %v435_v55 = vmul.f32 %v432_v48, %v1888_v50  ;;  %v55_v50 = vld [vmem:[%s2159_s0 + $0x18] sm:$0xff] }
 0x54e   :  { %1466 = vmatmul.msk.f32.gmra.mxu0 %vm65_vm1, %v55_v50 }
 0x585   :  { %v518_v25 = vpop.permute.xlu2 %517 }
 0x586   :  { %v520_v27 = vmul.f32 %v518_v25, %v512_v26 }
 0x588   :  { %522 = vrot.lane.b32.xlu1 %v520_v27, %s1663_s14 }
 0x5a1   :  { %v438_v47 = vpop.permute.xlu0 %437 }
 0x5a2   :  { %v440_v49 = vmul.f32 %v438_v47, %v432_v48 }
 0x5a4   :  { %442 = vrot.lane.b32.xlu2 %v440_v49, %s1663_s14 }
 0x5cb   :  { %v120_v2 = vpop.f32.mrf.mxu0 }
 0x5cc   :  { %v121_v10 = vadd.f32 %v1777_v9, %v120_v2 }
 0x5fa   :  { %v523_v52 = vpop.permute.xlu1 %522 }
 0x5fb   :  { %v1921_v54 = vadd.f32 %v523_v52, %v515_v51 }
 0x5fd   :  { %1561 = vtanh.f32 %v1921_v54 }
 0x5fe   :  { %v443_v56 = vpop.permute.xlu2 %442 }
 0x5ff   :  { %v1925_v34 = vadd.f32 %v443_v56, %v435_v55 }
 0x601   :  { %1563 = vtanh.f32 %v1925_v34 }
 0x603   :  { %v1562_v57 = vpop.eup %1561 }
 0x604   :  { %528 = vrot.lane.b32.xlu0 %v1562_v57, %s1663_s14 }
 0x607   :  { %v1564_v58 = vpop.eup %1563 }
 0x608   :  { %448 = vrot.lane.b32.xlu1 %v1564_v58, %s1663_s14 }
 0x676   :  { %v529_v59 = vpop.permute.xlu0 %528 }
 0x677   :  { %v531_v46 = vmul.f32 %v529_v59, %v512_v26 }
 0x679   :  { %533 = vrot.lane.b32.xlu2 %v531_v46, %s1664_s30 }
 0x67a   :  { %v449_v60 = vpop.permute.xlu1 %448 }
 0x67b   :  { %v451_v61 = vmul.f32 %v449_v60, %v432_v48 }
 0x67d   :  { %541 = vrot.lane.b32.xlu0 %v451_v61, %s1664_s30 }
 0x6d3   :  { %v534_v62 = vpop.permute.xlu2 %533 }
 0x6d4   :  { %537 = vst.msk [vmem:[#allocation5 + $0x8] sm:$0xff] %vm45_vm2, %v534_v62  ;;  %1485 = vmatmul.msk.f32.vlgmr.msra.gmra.mxu3 %vm45_vm2, %v534_v62 }
 0x6d5   :  { %919 = vmatpush.msra.mxu3 %v1790_v36 }
 0x6d7   :  { %920 = vmatpush.msra.mxu3 %v1795_v37 }
 0x6d9   :  { %921 = vmatpush.msra.mxu3 %v1809_v40 }
 0x6db   :  { %922 = vmatpush.msra.mxu3 %v1827_v43 }
 0x6ef   :  { %v542_v63 = vpop.permute.xlu0 %541 }
 0x6f0   :  { %1483 = vmatmul.msk.f32.vlgmr.msra.gmra.mxu2 %vm45_vm2, %v542_v63  ;;  %1486 = vmatmul.msk.f32.vlgmr.msrb.gmra.mxu1 %vm45_vm2, %v542_v63 }
 0x6f1   :  { %859 = vmatpush.msra.mxu2 %v1729_v0  ;;  %939 = vmatpush.msrb.mxu1 %v1801_v38 }
 0x6f3   :  { %860 = vmatpush.msra.mxu2 %v1734_v1  ;;  %940 = vmatpush.msrb.mxu1 %v1816_v41 }
 0x6f5   :  { %861 = vmatpush.msra.mxu2 %v1746_v4  ;;  %941 = vmatpush.msrb.mxu1 %v1822_v42 }
 0x6f7   :  { %862 = vmatpush.msra.mxu2 %v1758_v6  ;;  %942 = vmatpush.msrb.mxu1 %v1834_v44 }
 0x757   :  { %v622_v3 = vpop.f32.mrf.mxu3 }
 0x76d   :  { %v642_v5 = vpop.f32.mrf.mxu1 }
 0x76e   :  { %v643_v7 = vadd.f32 %v642_v5, %v622_v3 }
 0x770   :  { %v645_v8 = vadd.f32 %v1875_v53, %v643_v7 }
 0x772   :  { %1565 = vtanh.f32 %v645_v8  ;;  %v1487_v18 = vmul.f32 -1.442695, %v645_v8 }
 0x773   :  { %v562_v11 = vpop.f32.mrf.mxu2 }
 0x774   :  { %v565_v12 = vadd.f32 %v562_v11, %v121_v10 }
 0x776   :  { %1567 = vtanh.f32 %v565_v12  ;;  %v1484_v15 = vmul.f32 -1.442695, %v565_v12 }
 0x778   :  { %v1566_v13 = vpop.eup %1565  ;;  %1569 = vpow2.f32 %v1484_v15 }
 0x779   :  { %668 = vrot.lane.b32.xlu1 %v1566_v13, %s1663_s14 }
 0x77c   :  { %v1568_v14 = vpop.eup %1567 }
 0x77d   :  { %588 = vrot.lane.b32.xlu2 %v1568_v14, %s1663_s14 }
 0x77e   :  { %v1570_v16 = vpop.eup %1569 }
 0x77f   :  { %v569_v17 = vadd.f32 1.0, %v1570_v16 }
 0x781   :  { %1571 = vrcp.f32 %v569_v17  ;;  %v581_v26 = vand.u32 2147483648, %v569_v17  ;;  %vm575_vm10 = vweird.f32 %v569_v17  ;;  %v579_v27 = vand.u32 2147483647, %v569_v17 }
 0x782   :  { %1573 = vpow2.f32 %v1487_v18 }
 0x783   :  { %v582_v30 = vor.u32 1.1754944e-38, %v581_v26  ;;  %vm580_vm12 = vcmp.eq.f32.partialorder %v579_v27, 8.507059e+37 }
 0x787   :  { %v1572_v19 = vpop.eup %1571 }
 0x788   :  { %v571_v20 = vmul.f32 %v1572_v19, %v569_v17  ;;  %v1574_v21 = vpop.eup %1573  ;;  %vm576_vm9 = vweird.f32 %v1572_v19 }
 0x789   :  { %v649_v23 = vadd.f32 1.0, %v1574_v21  ;;  %vm577_vm11 = vmor %vm575_vm10, %vm576_vm9 }
 0x78a   :  { %v572_v22 = vsub.f32 1.0, %v571_v20 }
 0x78b   :  { %1575 = vrcp.f32 %v649_v23  ;;  %v661_v48 = vand.u32 2147483648, %v649_v23  ;;  %vm655_vm14 = vweird.f32 %v649_v23  ;;  %v659_v49 = vand.u32 2147483647, %v649_v23 }
 0x78c   :  { %v573_v24 = vmul.f32 %v1572_v19, %v572_v22 }
 0x78d   :  { %v662_v52 = vor.u32 1.1754944e-38, %v661_v48  ;;  %vm660_vm0 = vcmp.eq.f32.partialorder %v659_v49, 8.507059e+37 }
 0x78e   :  { %v574_v25 = vadd.f32 %v1572_v19, %v573_v24 }
 0x790   :  { %v578_v28 = vsel %vm577_vm11, %v1572_v19, %v574_v25 }
 0x791   :  { %v1576_v29 = vpop.eup %1575  ;;  %v583_v32 = vsel %vm580_vm12, %v582_v30, %v578_v28 }
 0x792   :  { %v651_v35 = vmul.f32 %v1576_v29, %v649_v23  ;;  %vm656_vm13 = vweird.f32 %v1576_v29  ;;  %v586_v58 = vmul.f32 %v583_v32, %v1925_v34 }
 0x793   :  { %vm657_vm15 = vmor %vm655_vm14, %vm656_vm13 }
 0x794   :  { %v652_v39 = vsub.f32 1.0, %v651_v35 }
 0x796   :  { %v653_v45 = vmul.f32 %v1576_v29, %v652_v39 }
 0x798   :  { %v654_v47 = vadd.f32 %v1576_v29, %v653_v45 }
 0x79a   :  { %v658_v51 = vsel %vm657_vm15, %v1576_v29, %v654_v47 }
 0x79b   :  { %v663_v56 = vsel %vm660_vm0, %v662_v52, %v658_v51 }
 0x79c   :  { %v666_v61 = vmul.f32 %v663_v56, %v1921_v54  ;;  %v56_v54 = vld [vmem:[%s2159_s0 + $0x20] sm:$0xff] }
 0x79d   :  { %1467 = vmatmul.msk.f32.gmra.mxu0 %vm65_vm1, %v56_v54 }
 0x7d7   :  { %v589_v31 = vpop.permute.xlu2 %588 }
 0x7d8   :  { %v591_v33 = vmul.f32 %v589_v31, %v583_v32 }
 0x7da   :  { %593 = vrot.lane.b32.xlu1 %v591_v33, %s1663_s14 }
 0x7eb   :  { %v669_v55 = vpop.permute.xlu1 %668 }
 0x7ec   :  { %v671_v57 = vmul.f32 %v669_v55, %v663_v56 }
 0x7ee   :  { %673 = vrot.lane.b32.xlu0 %v671_v57, %s1663_s14 }
 0x81a   :  { %v123_v10 = vpop.f32.mrf.mxu0 }
 0x81b   :  { %v124_v11 = vadd.f32 %v1777_v9, %v123_v10 }
 0x84c   :  { %v594_v59 = vpop.permute.xlu1 %593 }
 0x84d   :  { %v1959_v46 = vadd.f32 %v594_v59, %v586_v58 }
 0x84f   :  { %1577 = vtanh.f32 %v1959_v46 }
 0x855   :  { %v1578_v60 = vpop.eup %1577 }
 0x856   :  { %599 = vrot.lane.b32.xlu0 %v1578_v60, %s1663_s14 }
 0x860   :  { %v674_v50 = vpop.permute.xlu0 %673 }
 0x861   :  { %v1964_v62 = vadd.f32 %v674_v50, %v666_v61 }
 0x863   :  { %1579 = vtanh.f32 %v1964_v62 }
 0x869   :  { %v1580_v63 = vpop.eup %1579 }
 0x86a   :  { %679 = vrot.lane.b32.xlu2 %v1580_v63, %s1663_s14 }
 0x8c4   :  { %v680_v2 = vpop.permute.xlu2 %679 }
 0x8c5   :  { %v682_v34 = vmul.f32 %v680_v2, %v663_v56 }
 0x8c7   :  { %684 = vrot.lane.b32.xlu1 %v682_v34, %s1664_s30 }
 0x8c8   :  { %v600_v3 = vpop.permute.xlu0 %599 }
 0x8c9   :  { %v602_v5 = vmul.f32 %v600_v3, %v583_v32 }
 0x8cb   :  { %692 = vrot.lane.b32.xlu2 %v602_v5, %s1664_s30 }
 0x925   :  { %v693_v7 = vpop.permute.xlu2 %692 }
 0x926   :  { %1488 = vmatmul.msk.f32.vlgmr.msrb.gmra.mxu2 %vm45_vm2, %v693_v7  ;;  %1491 = vmatmul.msk.f32.vlgmr.msra.gmra.mxu1 %vm45_vm2, %v693_v7 }
 0x927   :  { %1010 = vmatpush.msrb.mxu2 %v1729_v0  ;;  %1090 = vmatpush.msra.mxu1 %v1801_v38 }
 0x929   :  { %1011 = vmatpush.msrb.mxu2 %v1734_v1  ;;  %1091 = vmatpush.msra.mxu1 %v1816_v41 }
 0x92b   :  { %1012 = vmatpush.msrb.mxu2 %v1746_v4  ;;  %1092 = vmatpush.msra.mxu1 %v1822_v42 }
 0x92d   :  { %1013 = vmatpush.msrb.mxu2 %v1758_v6  ;;  %1093 = vmatpush.msra.mxu1 %v1834_v44 }
 0x939   :  { %v685_v8 = vpop.permute.xlu1 %684 }
 0x93a   :  { %688 = vst.msk [vmem:[#allocation5 + $0x10] sm:$0xff] %vm45_vm2, %v685_v8  ;;  %1490 = vmatmul.msk.f32.vlgmr.msrb.gmra.mxu3 %vm45_vm2, %v685_v8 }
 0x93b   :  { %1070 = vmatpush.msrb.mxu3 %v1790_v36 }
 0x93d   :  { %1071 = vmatpush.msrb.mxu3 %v1795_v37 }
 0x93f   :  { %1072 = vmatpush.msrb.mxu3 %v1809_v40 }
 0x941   :  { %1073 = vmatpush.msrb.mxu3 %v1827_v43 }
 0x9a3   :  { %v793_v15 = vpop.f32.mrf.mxu1 }
 0x9a9   :  { %v713_v12 = vpop.f32.mrf.mxu2 }
 0x9aa   :  { %v716_v13 = vadd.f32 %v713_v12, %v124_v11 }
 0x9ac   :  { %1581 = vtanh.f32 %v716_v13  ;;  %v1489_v20 = vmul.f32 -1.442695, %v716_v13 }
 0x9b2   :  { %v1582_v14 = vpop.eup %1581 }
 0x9b3   :  { %739 = vrot.lane.b32.xlu1 %v1582_v14, %s1663_s14 }
 0x9bd   :  { %v773_v16 = vpop.f32.mrf.mxu3 }
 0x9be   :  { %v794_v17 = vadd.f32 %v793_v15, %v773_v16 }
 0x9c0   :  { %v796_v18 = vadd.f32 %v1875_v53, %v794_v17 }
 0x9c2   :  { %1583 = vtanh.f32 %v796_v18  ;;  %v1492_v23 = vmul.f32 -1.442695, %v796_v18 }
 0x9c3   :  { %1585 = vpow2.f32 %v1489_v20 }
 0x9c8   :  { %v1584_v19 = vpop.eup %1583 }
 0x9c9   :  { %819 = vrot.lane.b32.xlu0 %v1584_v19, %s1663_s14  ;;  %v1586_v21 = vpop.eup %1585 }
 0x9ca   :  { %v720_v22 = vadd.f32 1.0, %v1586_v21 }
 0x9cc   :  { %1587 = vrcp.f32 %v720_v22  ;;  %v732_v31 = vand.u32 2147483648, %v720_v22  ;;  %vm726_vm4 = vweird.f32 %v720_v22  ;;  %v730_v32 = vand.u32 2147483647, %v720_v22 }
 0x9cd   :  { %1589 = vpow2.f32 %v1492_v23 }
 0x9ce   :  { %v733_v35 = vor.u32 1.1754944e-38, %v732_v31  ;;  %vm731_vm6 = vcmp.eq.f32.partialorder %v730_v32, 8.507059e+37 }
 0x9d2   :  { %v1588_v24 = vpop.eup %1587 }
 0x9d3   :  { %v722_v25 = vmul.f32 %v1588_v24, %v720_v22  ;;  %v1590_v27 = vpop.eup %1589  ;;  %vm727_vm3 = vweird.f32 %v1588_v24 }
 0x9d4   :  { %v800_v29 = vadd.f32 1.0, %v1590_v27  ;;  %vm728_vm5 = vmor %vm726_vm4, %vm727_vm3 }
 0x9d5   :  { %v723_v26 = vsub.f32 1.0, %v722_v25 }
 0x9d6   :  { %1591 = vrcp.f32 %v800_v29  ;;  %v812_v56 = vand.u32 2147483648, %v800_v29  ;;  %vm806_vm8 = vweird.f32 %v800_v29  ;;  %v810_v57 = vand.u32 2147483647, %v800_v29 }
 0x9d7   :  { %v724_v28 = vmul.f32 %v1588_v24, %v723_v26 }
 0x9d8   :  { %v813_v59 = vor.u32 1.1754944e-38, %v812_v56  ;;  %vm811_vm10 = vcmp.eq.f32.partialorder %v810_v57, 8.507059e+37 }
 0x9d9   :  { %v725_v30 = vadd.f32 %v1588_v24, %v724_v28 }
 0x9db   :  { %v729_v33 = vsel %vm728_vm5, %v1588_v24, %v725_v30 }
 0x9dc   :  { %v1592_v39 = vpop.eup %1591  ;;  %v734_v47 = vsel %vm731_vm6, %v733_v35, %v729_v33 }
 0x9dd   :  { %v802_v49 = vmul.f32 %v1592_v39, %v800_v29  ;;  %vm807_vm7 = vweird.f32 %v1592_v39  ;;  %v737_v3 = vmul.f32 %v734_v47, %v1959_v46  ;;  %v57_v46 = vld [vmem:[%s2159_s0 + $0x28] sm:$0xff] }
 0x9de   :  { %vm808_vm9 = vmor %vm806_vm8, %vm807_vm7  ;;  %1468 = vmatmul.msk.f32.gmra.mxu0 %vm65_vm1, %v57_v46  ;;  %v1658_v46 = vld [vmem:[%s2163_s5 + $0x8] sm:$0xff] }
 0x9df   :  { %v803_v51 = vsub.f32 1.0, %v802_v49 }
 0x9e1   :  { %v804_v52 = vmul.f32 %v1592_v39, %v803_v51 }
 0x9e3   :  { %v805_v55 = vadd.f32 %v1592_v39, %v804_v52 }
 0x9e5   :  { %v809_v58 = vsel %vm808_vm9, %v1592_v39, %v805_v55 }
 0x9e6   :  { %v814_v61 = vsel %vm811_vm10, %v813_v59, %v809_v58 }
 0x9e7   :  { %v817_v63 = vmul.f32 %v814_v61, %v1964_v62 }
 0xa25   :  { %v740_v45 = vpop.permute.xlu1 %739 }
 0xa26   :  { %v742_v48 = vmul.f32 %v740_v45, %v734_v47 }
 0xa28   :  { %744 = vrot.lane.b32.xlu0 %v742_v48, %s1663_s14 }
 0xa3b   :  { %v820_v60 = vpop.permute.xlu0 %819 }
 0xa3c   :  { %v822_v50 = vmul.f32 %v820_v60, %v814_v61 }
 0xa3e   :  { %824 = vrot.lane.b32.xlu2 %v822_v50, %s1663_s14 }
 0xa98   :  { %v825_v2 = vpop.permute.xlu2 %824 }
 0xa99   :  { %v1997_v34 = vadd.f32 %v825_v2, %v817_v63 }
 0xa9a   :  { %v745_v5 = vpop.permute.xlu0 %744 }
 0xa9b   :  { %1593 = vtanh.f32 %v1997_v34  ;;  %v2001_v54 = vadd.f32 %v745_v5, %v737_v3 }
 0xa9d   :  { %1595 = vtanh.f32 %v2001_v54 }
 0xaa1   :  { %v1594_v7 = vpop.eup %1593 }
 0xaa2   :  { %830 = vrot.lane.b32.xlu1 %v1594_v7, %s1663_s14 }
 0xaa3   :  { %v1596_v8 = vpop.eup %1595 }
 0xaa4   :  { %750 = vrot.lane.b32.xlu2 %v1596_v8, %s1663_s14  ;;  %v1653_v8 = vld [vmem:[%s2164_s4 + $0x18] sm:$0xff] }
 0xafe   :  { %v751_v10 = vpop.permute.xlu2 %750 }
 0xaff   :  { %v753_v62 = vmul.f32 %v751_v10, %v734_v47  ;;  %v1654_v10 = vld [vmem:[%s2163_s5 + $0x18] sm:$0xff] }
 0xb01   :  { %843 = vrot.lane.b32.xlu1 %v753_v62, %s1664_s30  ;;  %v1655_v62 = vld [vmem:[%s2164_s4 + $0x10] sm:$0xff] }
 0xb14   :  { %v831_v11 = vpop.permute.xlu1 %830 }
 0xb15   :  { %v833_v12 = vmul.f32 %v831_v11, %v814_v61  ;;  %v1656_v11 = vld [vmem:[%s2163_s5 + $0x10] sm:$0xff] }
 0xb17   :  { %835 = vrot.lane.b32.xlu0 %v833_v12, %s1664_s30  ;;  %v1657_v12 = vld [vmem:[%s2164_s4 + $0x8] sm:$0xff] }
 0xb73   :  { %v844_v13 = vpop.permute.xlu1 %843 }
 0xb74   :  { %1493 = vmatmul.msk.f32.vlgmr.msra.gmra.mxu2 %vm45_vm2, %v844_v13  ;;  %1496 = vmatmul.msk.f32.vlgmr.msrb.gmra.mxu1 %vm45_vm2, %v844_v13  ;;  %v1659_v13 = vld [vmem:[%s2164_s4] sm:$0xff] }
 0xb75   :  { %1161 = vmatpush.msra.mxu2 %v1729_v0  ;;  %1241 = vmatpush.msrb.mxu1 %v1801_v38  ;;  %v126_v0 = vpop.f32.mrf.mxu0 }
 0xb77   :  { %1162 = vmatpush.msra.mxu2 %v1734_v1  ;;  %1242 = vmatpush.msrb.mxu1 %v1816_v41  ;;  %v127_v1 = vadd.f32 %v1777_v9, %v126_v0 }
 0xb79   :  { %1163 = vmatpush.msra.mxu2 %v1746_v4  ;;  %1243 = vmatpush.msrb.mxu1 %v1822_v42 }
 0xb7b   :  { %1164 = vmatpush.msra.mxu2 %v1758_v6  ;;  %1244 = vmatpush.msrb.mxu1 %v1834_v44 }
 0xb89   :  { %v836_v14 = vpop.permute.xlu0 %835 }
 0xb8a   :  { %839 = vst.msk [vmem:[#allocation5 + $0x18] sm:$0xff] %vm45_vm2, %v836_v14  ;;  %1495 = vmatmul.msk.f32.vlgmr.msra.gmra.mxu3 %vm45_vm2, %v836_v14  ;;  %v1660_v14 = vld [vmem:[%s2163_s5] sm:$0xff] }
 0xb8b   :  { %1221 = vmatpush.msra.mxu3 %v1790_v36 }
 0xb8d   :  { %1222 = vmatpush.msra.mxu3 %v1795_v37 }
 0xb8f   :  { %1223 = vmatpush.msra.mxu3 %v1809_v40 }
 0xb91   :  { %1224 = vmatpush.msra.mxu3 %v1827_v43 }
 0xbf1   :  { %v944_v41 = vpop.f32.mrf.mxu1 }
 0xbf7   :  { %v864_v4 = vpop.f32.mrf.mxu2 }
 0xbf8   :  { %v867_v6 = vadd.f32 %v864_v4, %v127_v1  ;;  %v2081_v1 = vld [vmem:[%s2161_s3] ss:$0 sm:$0xff] }
 0xbfa   :  { %1597 = vtanh.f32 %v867_v6  ;;  %v1494_v40 = vmul.f32 -1.442695, %v867_v6 }
 0xc00   :  { %v1598_v38 = vpop.eup %1597 }
 0xc01   :  { %890 = vrot.lane.b32.xlu0 %v1598_v38, %s1663_s14 }
 0xc0d   :  { %v924_v42 = vpop.f32.mrf.mxu3 }
 0xc0e   :  { %v945_v44 = vadd.f32 %v944_v41, %v924_v42 }
 0xc10   :  { %v947_v36 = vadd.f32 %v1875_v53, %v945_v44 }
 0xc12   :  { %1599 = vtanh.f32 %v947_v36  ;;  %v1497_v43 = vmul.f32 -1.442695, %v947_v36 }
 0xc13   :  { %1601 = vpow2.f32 %v1494_v40 }
 0xc14   :  { %1603 = vpow2.f32 %v1497_v43 }
 0xc18   :  { %v1600_v37 = vpop.eup %1599 }
 0xc19   :  { %970 = vrot.lane.b32.xlu2 %v1600_v37, %s1663_s14  ;;  %v1602_v9 = vpop.eup %1601 }
 0xc1a   :  { %v1604_v15 = vpop.eup %1603  ;;  %v871_v16 = vadd.f32 1.0, %v1602_v9 }
 0xc1b   :  { %v951_v17 = vadd.f32 1.0, %v1604_v15 }
 0xc1c   :  { %1605 = vrcp.f32 %v871_v16  ;;  %vm877_vm13 = vweird.f32 %v871_v16  ;;  %v883_v29 = vand.u32 2147483648, %v871_v16  ;;  %v881_v31 = vand.u32 2147483647, %v871_v16 }
 0xc1d   :  { %1607 = vrcp.f32 %v951_v17  ;;  %v963_v28 = vand.u32 2147483648, %v951_v17  ;;  %vm957_vm14 = vweird.f32 %v951_v17  ;;  %v961_v30 = vand.u32 2147483647, %v951_v17 }
 0xc1e   :  { %v884_v39 = vor.u32 1.1754944e-38, %v883_v29  ;;  %vm882_vm4 = vcmp.eq.f32.partialorder %v881_v31, 8.507059e+37 }
 0xc1f   :  { %v964_v35 = vor.u32 1.1754944e-38, %v963_v28  ;;  %vm962_vm3 = vcmp.eq.f32.partialorder %v961_v30, 8.507059e+37 }
 0xc22   :  { %v1606_v18 = vpop.eup %1605 }
 0xc23   :  { %v1608_v19 = vpop.eup %1607  ;;  %v873_v21 = vmul.f32 %v1606_v18, %v871_v16  ;;  %vm878_vm11 = vweird.f32 %v1606_v18 }
 0xc24   :  { %v953_v20 = vmul.f32 %v1608_v19, %v951_v17  ;;  %vm958_vm12 = vweird.f32 %v1608_v19  ;;  %vm879_vm15 = vmor %vm877_vm13, %vm878_vm11 }
 0xc25   :  { %v874_v23 = vsub.f32 1.0, %v873_v21  ;;  %vm959_vm0 = vmor %vm957_vm14, %vm958_vm12 }
 0xc26   :  { %v954_v22 = vsub.f32 1.0, %v953_v20 }
 0xc27   :  { %v875_v25 = vmul.f32 %v1606_v18, %v874_v23 }
 0xc28   :  { %v955_v24 = vmul.f32 %v1608_v19, %v954_v22 }
 0xc29   :  { %v876_v27 = vadd.f32 %v1606_v18, %v875_v25 }
 0xc2a   :  { %v956_v26 = vadd.f32 %v1608_v19, %v955_v24 }
 0xc2b   :  { %v880_v33 = vsel %vm879_vm15, %v1606_v18, %v876_v27 }
 0xc2c   :  { %v960_v32 = vsel %vm959_vm0, %v1608_v19, %v956_v26  ;;  %v885_v49 = vsel %vm882_vm4, %v884_v39, %v880_v33 }
 0xc2d   :  { %v965_v47 = vsel %vm962_vm3, %v964_v35, %v960_v32  ;;  %v888_v55 = vmul.f32 %v885_v49, %v2001_v54 }
 0xc2e   :  { %v968_v59 = vmul.f32 %v965_v47, %v1997_v34  ;;  %v58_v34 = vld [vmem:[%s2159_s0 + $0x30] sm:$0xff] }
 0xc2f   :  { %1469 = vmatmul.msk.f32.gmra.mxu0 %vm65_vm1, %v58_v34 }
 0xc73   :  { %v971_v45 = vpop.permute.xlu2 %970  ;;  %v891_v48 = vpop.permute.xlu0 %890 }
 0xc74   :  { %v973_v51 = vmul.f32 %v971_v45, %v965_v47  ;;  %v893_v52 = vmul.f32 %v891_v48, %v885_v49 }
 0xc76   :  { %975 = vrot.lane.b32.xlu1 %v973_v51, %s1663_s14  ;;  %895 = vrot.lane.b32.xlu2 %v893_v52, %s1663_s14 }
 0xcac   :  { %v129_v0 = vpop.f32.mrf.mxu0 }
 0xcad   :  { %v130_v4 = vadd.f32 %v2081_v1, %v129_v0  ;;  %v2114_v0 = vld [vmem:[%s2165_s6] ss:$0 sm:$0xff]  ;;  %s1665_s6 = smov 96  }
 0xcd0   :  { %v896_v56 = vpop.permute.xlu2 %895 }
 0xcd1   :  { %v2035_v57 = vadd.f32 %v896_v56, %v888_v55 }
 0xcd3   :  { %1609 = vtanh.f32 %v2035_v57 }
 0xcd9   :  { %v1610_v58 = vpop.eup %1609 }
 0xcda   :  { %901 = vrot.lane.b32.xlu1 %v1610_v58, %s1663_s14 }
 0xce8   :  { %v976_v60 = vpop.permute.xlu1 %975 }
 0xce9   :  { %v2040_v61 = vadd.f32 %v976_v60, %v968_v59 }
 0xceb   :  { %1611 = vtanh.f32 %v2040_v61 }
 0xcf1   :  { %v1612_v50 = vpop.eup %1611 }
 0xcf2   :  { %981 = vrot.lane.b32.xlu0 %v1612_v50, %s1663_s14 }
 0xd4c   :  { %v902_v63 = vpop.permute.xlu1 %901 }
 0xd4d   :  { %v904_v2 = vmul.f32 %v902_v63, %v885_v49 }
 0xd4f   :  { %994 = vrot.lane.b32.xlu0 %v904_v2, %s1664_s30 }
 0xd64   :  { %v982_v3 = vpop.permute.xlu0 %981 }
 0xd65   :  { %v984_v5 = vmul.f32 %v982_v3, %v965_v47 }
 0xd67   :  { %986 = vrot.lane.b32.xlu2 %v984_v5, %s1664_s30 }
 0xdc1   :  { %v987_v54 = vpop.permute.xlu2 %986  ;;  %v995_v7 = vpop.permute.xlu0 %994 }
 0xdc2   :  { %990 = vst.msk [vmem:[#allocation5 + $0x20] sm:$0xff] %vm45_vm2, %v987_v54  ;;  %1498 = vmatmul.msk.f32.vlgmr.msrb.gmra.mxu2 %vm45_vm2, %v995_v7  ;;  %1500 = vmatmul.msk.f32.vlgmr.msrb.gmra.mxu3 %vm45_vm2, %v987_v54 }
 0xdc3   :  { %1501 = vmatmul.msk.f32.vlgmr.msra.gmra.mxu1 %vm45_vm2, %v995_v7  ;;  %1332 = vmatpush.msrb.mxu3 %v1653_v8 }
 0xdc4   :  { %1307 = vmatpush.msrb.mxu2 %v1654_v10 }
 0xdc5   :  { %1333 = vmatpush.msrb.mxu3 %v1655_v62 }
 0xdc6   :  { %1308 = vmatpush.msrb.mxu2 %v1656_v11 }
 0xdc7   :  { %1334 = vmatpush.msrb.mxu3 %v1657_v12 }
 0xdc8   :  { %1309 = vmatpush.msrb.mxu2 %v1658_v46 }
 0xdc9   :  { %1335 = vmatpush.msrb.mxu3 %v1659_v13 }
 0xdca   :  { %1310 = vmatpush.msrb.mxu2 %v1660_v14 }
 0xe40   :  { %v1095_v6 = vpop.f32.mrf.mxu1 }
 0xe45   :  { %v1015_v38 = vpop.f32.mrf.mxu2  ;;  %v1075_v41 = vpop.f32.mrf.mxu3 }
 0xe46   :  { %v1018_v42 = vadd.f32 %v1015_v38, %v130_v4  ;;  %v1096_v44 = vadd.f32 %v1095_v6, %v1075_v41 }
 0xe48   :  { %1613 = vtanh.f32 %v1018_v42  ;;  %v1098_v36 = vadd.f32 %v1875_v53, %v1096_v44  ;;  %v1499_v43 = vmul.f32 -1.442695, %v1018_v42 }
 0xe4a   :  { %1615 = vtanh.f32 %v1098_v36  ;;  %v1502_v18 = vmul.f32 -1.442695, %v1098_v36 }
 0xe4b   :  { %1617 = vpow2.f32 %v1499_v43 }
 0xe4e   :  { %v1614_v37 = vpop.eup %1613 }
 0xe4f   :  { %1041 = vrot.lane.b32.xlu2 %v1614_v37, %s1663_s14 }
 0xe50   :  { %v1616_v40 = vpop.eup %1615 }
 0xe51   :  { %1121 = vrot.lane.b32.xlu1 %v1616_v40, %s1663_s14  ;;  %v1618_v9 = vpop.eup %1617 }
 0xe52   :  { %v1022_v15 = vadd.f32 1.0, %v1618_v9 }
 0xe54   :  { %1619 = vrcp.f32 %v1022_v15  ;;  %v1034_v22 = vand.u32 2147483648, %v1022_v15  ;;  %vm1028_vm6 = vweird.f32 %v1022_v15  ;;  %v1032_v24 = vand.u32 2147483647, %v1022_v15 }
 0xe55   :  { %1621 = vpow2.f32 %v1502_v18 }
 0xe56   :  { %v1035_v26 = vor.u32 1.1754944e-38, %v1034_v22  ;;  %vm1033_vm8 = vcmp.eq.f32.partialorder %v1032_v24, 8.507059e+37 }
 0xe5a   :  { %v1620_v16 = vpop.eup %1619 }
 0xe5b   :  { %v1024_v17 = vmul.f32 %v1620_v16, %v1022_v15  ;;  %v1622_v21 = vpop.eup %1621  ;;  %vm1029_vm5 = vweird.f32 %v1620_v16 }
 0xe5c   :  { %v1102_v23 = vadd.f32 1.0, %v1622_v21  ;;  %vm1030_vm7 = vmor %vm1028_vm6, %vm1029_vm5 }
 0xe5d   :  { %v1025_v19 = vsub.f32 1.0, %v1024_v17 }
 0xe5e   :  { %1623 = vrcp.f32 %v1102_v23  ;;  %v1114_v39 = vand.u32 2147483648, %v1102_v23  ;;  %vm1108_vm10 = vweird.f32 %v1102_v23  ;;  %v1112_v45 = vand.u32 2147483647, %v1102_v23 }
 0xe5f   :  { %v1026_v20 = vmul.f32 %v1620_v16, %v1025_v19 }
 0xe60   :  { %v1115_v48 = vor.u32 1.1754944e-38, %v1114_v39  ;;  %vm1113_vm12 = vcmp.eq.f32.partialorder %v1112_v45, 8.507059e+37 }
 0xe61   :  { %v1027_v53 = vadd.f32 %v1620_v16, %v1026_v20 }
 0xe63   :  { %v1031_v25 = vsel %vm1030_vm7, %v1620_v16, %v1027_v53 }
 0xe64   :  { %v1036_v28 = vsel %vm1033_vm8, %v1035_v26, %v1031_v25  ;;  %v1624_v30 = vpop.eup %1623 }
 0xe65   :  { %v1104_v31 = vmul.f32 %v1624_v30, %v1102_v23  ;;  %vm1109_vm9 = vweird.f32 %v1624_v30  ;;  %v1039_v55 = vmul.f32 %v1036_v28, %v2035_v57 }
 0xe66   :  { %vm1110_vm11 = vmor %vm1108_vm10, %vm1109_vm9  ;;  %vm1456_vm10 = vcmask 516096  }
 0xe67   :  { %v1105_v32 = vsub.f32 1.0, %v1104_v31 }
 0xe69   :  { %v1106_v33 = vmul.f32 %v1624_v30, %v1105_v32 }
 0xe6b   :  { %v1107_v35 = vadd.f32 %v1624_v30, %v1106_v33 }
 0xe6d   :  { %v1111_v47 = vsel %vm1110_vm11, %v1624_v30, %v1107_v35 }
 0xe6e   :  { %v1116_v51 = vsel %vm1113_vm12, %v1115_v48, %v1111_v47 }
 0xe6f   :  { %v1119_v60 = vmul.f32 %v1116_v51, %v2040_v61  ;;  %v59_v61 = vld [vmem:[%s2159_s0 + $0x38] sm:$0xff] }
 0xe70   :  { %1470 = vmatmul.msk.f32.gmra.mxu0 %vm65_vm1, %v59_v61 }
 0xea9   :  { %v1042_v27 = vpop.permute.xlu2 %1041 }
 0xeaa   :  { %v1044_v29 = vmul.f32 %v1042_v27, %v1036_v28 }
 0xeac   :  { %1046 = vrot.lane.b32.xlu1 %v1044_v29, %s1663_s14 }
 0xec3   :  { %v1122_v49 = vpop.permute.xlu1 %1121 }
 0xec4   :  { %v1124_v52 = vmul.f32 %v1122_v49, %v1116_v51 }
 0xec6   :  { %1126 = vrot.lane.b32.xlu0 %v1124_v52, %s1663_s14 }
 0xeed   :  { %v132_v8 = vpop.f32.mrf.mxu0 }
 0xeee   :  { %v133_v10 = vadd.f32 %v2081_v1, %v132_v8 }
 0xf1e   :  { %v1047_v56 = vpop.permute.xlu1 %1046 }
 0xf1f   :  { %v2090_v58 = vadd.f32 %v1047_v56, %v1039_v55 }
 0xf21   :  { %1625 = vtanh.f32 %v2090_v58 }
 0xf27   :  { %v1626_v59 = vpop.eup %1625 }
 0xf28   :  { %1052 = vrot.lane.b32.xlu0 %v1626_v59, %s1663_s14 }
 0xf38   :  { %v1127_v50 = vpop.permute.xlu0 %1126 }
 0xf39   :  { %v2095_v63 = vadd.f32 %v1127_v50, %v1119_v60 }
 0xf3b   :  { %1627 = vtanh.f32 %v2095_v63 }
 0xf41   :  { %v1628_v2 = vpop.eup %1627 }
 0xf42   :  { %1132 = vrot.lane.b32.xlu2 %v1628_v2, %s1663_s14 }
 0xf9a   :  { %v1053_v3 = vpop.permute.xlu0 %1052 }
 0xf9b   :  { %v1055_v57 = vmul.f32 %v1053_v3, %v1036_v28 }
 0xf9c   :  { %v1133_v5 = vpop.permute.xlu2 %1132 }
 0xf9d   :  { %1145 = vrot.lane.b32.xlu2 %v1055_v57, %s1664_s30  ;;  %v1135_v34 = vmul.f32 %v1133_v5, %v1116_v51 }
 0xf9f   :  { %1137 = vrot.lane.b32.xlu1 %v1135_v34, %s1664_s30 }
 0xff7   :  { %v1146_v54 = vpop.permute.xlu2 %1145 }
 0xff8   :  { %1503 = vmatmul.msk.f32.vlgmr.msra.gmra.mxu2 %vm45_vm2, %v1146_v54  ;;  %1506 = vmatmul.msk.f32.vlgmr.msrb.gmra.mxu1 %vm45_vm2, %v1146_v54 }
0x1011   :  { %v1138_v7 = vpop.permute.xlu1 %1137 }
0x1012   :  { %1141 = vst.msk [vmem:[#allocation5 + $0x28] sm:$0xff] %vm45_vm2, %v1138_v7  ;;  %1505 = vmatmul.msk.f32.vlgmr.msra.gmra.mxu3 %vm45_vm2, %v1138_v7 }
0x1075   :  { %v1246_v46 = vpop.f32.mrf.mxu1 }
0x107b   :  { %v1166_v62 = vpop.f32.mrf.mxu2 }
0x107c   :  { %v1169_v11 = vadd.f32 %v1166_v62, %v133_v10 }
0x107e   :  { %1629 = vtanh.f32 %v1169_v11  ;;  %v1504_v1 = vmul.f32 -1.442695, %v1169_v11 }
0x1084   :  { %v1630_v12 = vpop.eup %1629 }
0x1085   :  { %1192 = vrot.lane.b32.xlu0 %v1630_v12, %s1663_s14 }
0x1095   :  { %v1226_v13 = vpop.f32.mrf.mxu3 }
0x1096   :  { %v1247_v14 = vadd.f32 %v1246_v46, %v1226_v13 }
0x1098   :  { %v1249_v4 = vadd.f32 %v2114_v0, %v1247_v14 }
0x109a   :  { %1631 = vtanh.f32 %v1249_v4  ;;  %v1507_v36 = vmul.f32 -1.442695, %v1249_v4 }
0x109b   :  { %1633 = vpow2.f32 %v1504_v1 }
0x10a0   :  { %v1632_v6 = vpop.eup %1631 }
0x10a1   :  { %1272 = vrot.lane.b32.xlu1 %v1632_v6, %s1663_s14  ;;  %v1634_v38 = vpop.eup %1633 }
0x10a2   :  { %v1173_v41 = vadd.f32 1.0, %v1634_v38 }
0x10a4   :  { %1635 = vrcp.f32 %v1173_v41  ;;  %v1185_v15 = vand.u32 2147483648, %v1173_v41  ;;  %vm1179_vm13 = vweird.f32 %v1173_v41  ;;  %v1183_v16 = vand.u32 2147483647, %v1173_v41 }
0x10a5   :  { %1637 = vpow2.f32 %v1507_v36 }
0x10a6   :  { %v1186_v19 = vor.u32 1.1754944e-38, %v1185_v15  ;;  %vm1184_vm15 = vcmp.eq.f32.partialorder %v1183_v16, 8.507059e+37  ;;  %v1402_v16 = vld [vmem:[#allocation5 + $0x28] sm:$0xff] }
0x10aa   :  { %v1636_v42 = vpop.eup %1635 }
0x10ab   :  { %v1175_v44 = vmul.f32 %v1636_v42, %v1173_v41  ;;  %vm1180_vm1 = vweird.f32 %v1636_v42  ;;  %v1638_v9 = vpop.eup %1637 }
0x10ac   :  { %vm1181_vm14 = vmor %vm1179_vm13, %vm1180_vm1  ;;  %v1253_v17 = vadd.f32 1.0, %v1638_v9 }
0x10ad   :  { %v1176_v37 = vsub.f32 1.0, %v1175_v44 }
0x10ae   :  { %1639 = vrcp.f32 %v1253_v17  ;;  %v1265_v27 = vand.u32 2147483648, %v1253_v17  ;;  %vm1259_vm3 = vweird.f32 %v1253_v17  ;;  %v1263_v28 = vand.u32 2147483647, %v1253_v17 }
0x10af   :  { %v1177_v40 = vmul.f32 %v1636_v42, %v1176_v37 }
0x10b0   :  { %v1266_v30 = vor.u32 1.1754944e-38, %v1265_v27  ;;  %vm1264_vm5 = vcmp.eq.f32.partialorder %v1263_v28, 8.507059e+37 }
0x10b1   :  { %v1178_v43 = vadd.f32 %v1636_v42, %v1177_v40 }
0x10b3   :  { %v1182_v18 = vsel %vm1181_vm14, %v1636_v42, %v1178_v43 }
0x10b4   :  { %v1187_v21 = vsel %vm1184_vm15, %v1186_v19, %v1182_v18  ;;  %v1640_v22 = vpop.eup %1639  ;;  %v1400_v18 = vld [vmem:[#allocation5 + $0x18] sm:$0xff]  ;;  %v1399_v19 = vld [vmem:[#allocation5 + $0x10] sm:$0xff] }
0x10b5   :  { %v1255_v23 = vmul.f32 %v1640_v22, %v1253_v17  ;;  %vm1260_vm0 = vweird.f32 %v1640_v22  ;;  %v1190_v35 = vmul.f32 %v1187_v21, %v2090_v58  ;;  %v1401_v17 = vld [vmem:[#allocation5 + $0x20] sm:$0xff] }
0x10b6   :  { %vm1261_vm4 = vmor %vm1259_vm3, %vm1260_vm0 }
0x10b7   :  { %v1256_v24 = vsub.f32 1.0, %v1255_v23 }
0x10b9   :  { %v1257_v25 = vmul.f32 %v1640_v22, %v1256_v24 }
0x10bb   :  { %v1258_v26 = vadd.f32 %v1640_v22, %v1257_v25 }
0x10bd   :  { %v1262_v29 = vsel %vm1261_vm4, %v1640_v22, %v1258_v26  ;;  %v1454_v22 = vstv %s2167_s10 }
0x10be   :  { %v1267_v32 = vsel %vm1264_vm5, %v1266_v30, %v1262_v29 }
0x10bf   :  { %v1270_v48 = vmul.f32 %v1267_v32, %v2095_v63 }
0x10f7   :  { %v1193_v20 = vpop.permute.xlu0 %1192 }
0x10f8   :  { %v1195_v53 = vmul.f32 %v1193_v20, %v1187_v21  ;;  %v1398_v20 = vld [vmem:[#allocation5 + $0x8] sm:$0xff] }
0x10fa   :  { %1197 = vrot.lane.b32.xlu2 %v1195_v53, %s1663_s14  ;;  %v1405_v53 = vld [vmem:[%s2166_s9] sm:$0xff] }
0x1113   :  { %v1273_v31 = vpop.permute.xlu1 %1272 }
0x1114   :  { %v1275_v33 = vmul.f32 %v1273_v31, %v1267_v32 }
0x1116   :  { %1277 = vrot.lane.b32.xlu0 %v1275_v33, %s1663_s14 }
0x1154   :  { %v1198_v39 = vpop.permute.xlu2 %1197 }
0x1155   :  { %v1200_v45 = vadd.f32 %v1198_v39, %v1190_v35 }
0x1157   :  { %1641 = vtanh.f32 %v1200_v45 }
0x115d   :  { %v1642_v47 = vpop.eup %1641 }
0x115e   :  { %1203 = vrot.lane.b32.xlu1 %v1642_v47, %s1663_s14 }
0x1188   :  { %v1278_v49 = vpop.permute.xlu0 %1277 }
0x1189   :  { %v1280_v51 = vadd.f32 %v1278_v49, %v1270_v48 }
0x118b   :  { %1643 = vtanh.f32 %v1280_v51 }
0x1191   :  { %v1644_v52 = vpop.eup %1643 }
0x1192   :  { %1283 = vrot.lane.b32.xlu2 %v1644_v52, %s1663_s14 }
0x11d0   :  { %v1204_v55 = vpop.permute.xlu1 %1203 }
0x11d1   :  { %v1206_v56 = vmul.f32 %v1204_v55, %v1187_v21  ;;  %v1397_v21 = vld [vmem:[#allocation5] sm:$0xff] }
0x11d3   :  { %1316 = vrot.lane.b32.xlu1 %v1206_v56, %s1664_s30 }
0x11ec   :  { %v1284_v59 = vpop.permute.xlu2 %1283 }
0x11ed   :  { %v1286_v58 = vmul.f32 %v1284_v59, %v1267_v32 }
0x11ef   :  { %1288 = vrot.lane.b32.xlu0 %v1286_v58, %s1664_s30 }
0x1245   :  { %v1317_v60 = vpop.permute.xlu1 %1316 }
0x1246   :  { %1385 = vst.msk [vmem:[#allocation2] sm:$0xff] %vm45_vm2, %v1317_v60  ;;  %1509 = vmatmul.msk.f32.vlgmr.msrb.gmra.mxu3 %vm45_vm2, %v1317_v60 }
0x1261   :  { %v1289_v50 = vpop.permute.xlu0 %1288 }
0x1262   :  { %1292 = vst.msk [vmem:[#allocation5 + $0x30] sm:$0xff] %vm45_vm2, %v1289_v50  ;;  %1508 = vmatmul.msk.f32.vlgmr.msrb.gmra.mxu2 %vm45_vm2, %v1289_v50 }
0x1269   :  { %v1403_v15 = vld [vmem:[#allocation5 + $0x30] sm:$0xff] }
0x12c9   :  { %v1337_v63 = vpop.f32.mrf.mxu3 }
0x12e5   :  { %v1312_v2 = vpop.f32.mrf.mxu2 }
0x12e6   :  { %v1338_v3 = vadd.f32 %v1337_v63, %v1312_v2 }
0x12e8   :  { %v1340_v57 = vadd.f32 %v2114_v0, %v1338_v3 }
0x12ea   :  { %1645 = vtanh.f32 %v1340_v57  ;;  %v1510_v34 = vmul.f32 -1.442695, %v1340_v57 }
0x12ec   :  { %1647 = vpow2.f32 %v1510_v34 }
0x12f0   :  { %v1646_v5 = vpop.eup %1645 }
0x12f1   :  { %1363 = vrot.lane.b32.xlu2 %v1646_v5, %s1663_s14 }
0x12f2   :  { %v1648_v61 = vpop.eup %1647 }
0x12f3   :  { %v1344_v54 = vadd.f32 1.0, %v1648_v61 }
0x12f5   :  { %1649 = vrcp.f32 %v1344_v54  ;;  %v1356_v12 = vand.u32 2147483648, %v1344_v54  ;;  %vm1350_vm7 = vweird.f32 %v1344_v54  ;;  %v1354_v46 = vand.u32 2147483647, %v1344_v54 }
0x12f7   :  { %v1357_v14 = vor.u32 1.1754944e-38, %v1356_v12  ;;  %vm1355_vm9 = vcmp.eq.f32.partialorder %v1354_v46, 8.507059e+37 }
0x12fb   :  { %v1650_v7 = vpop.eup %1649 }
0x12fc   :  { %v1346_v8 = vmul.f32 %v1650_v7, %v1344_v54  ;;  %vm1351_vm6 = vweird.f32 %v1650_v7 }
0x12fd   :  { %vm1352_vm8 = vmor %vm1350_vm7, %vm1351_vm6 }
0x12fe   :  { %v1347_v10 = vsub.f32 1.0, %v1346_v8 }
0x1300   :  { %v1348_v62 = vmul.f32 %v1650_v7, %v1347_v10 }
0x1302   :  { %v1349_v11 = vadd.f32 %v1650_v7, %v1348_v62 }
0x1304   :  { %v1353_v13 = vsel %vm1352_vm8, %v1650_v7, %v1349_v11 }
0x1305   :  { %v1358_v4 = vsel %vm1355_vm9, %v1357_v14, %v1353_v13 }
0x1306   :  { %v1361_v1 = vmul.f32 %v1358_v4, %v1280_v51 }
0x134b   :  { %v1364_v0 = vpop.permute.xlu2 %1363 }
0x134c   :  { %v1366_v6 = vmul.f32 %v1364_v0, %v1358_v4 }
0x134e   :  { %1368 = vrot.lane.b32.xlu0 %v1366_v6, %s1663_s14 }
0x1356   :  { %1387 = vrot.lane.b32.xlu0 %v1200_v45, %s1665_s6 }
0x13c0   :  { %v1369_v38 = vpop.permute.xlu0 %1368 }
0x13c1   :  { %v1371_v41 = vadd.f32 %v1369_v38, %v1361_v1 }
0x13c3   :  { %1651 = vtanh.f32 %v1371_v41 }
0x13c8   :  { %v1388_v42 = vpop.permute.xlu0 %1387 }
0x13c9   :  { %v1652_v44 = vpop.eup %1651  ;;  %1390 = vst.msk [vmem:[#allocation3] sm:$0xff] %vm45_vm2, %v1388_v42 }
0x13ca   :  { %1374 = vrot.lane.b32.xlu1 %v1652_v44, %s1663_s14 }
0x13d2   :  { %1393 = vrot.lane.b32.xlu1 %v1371_v41, %s1665_s6 }
0x143c   :  { %v1375_v36 = vpop.permute.xlu1 %1374 }
0x143d   :  { %v1377_v37 = vmul.f32 %v1375_v36, %v1358_v4 }
0x143f   :  { %1379 = vrot.lane.b32.xlu2 %v1377_v37, %s1664_s30 }
0x1444   :  { %v1394_v40 = vpop.permute.xlu1 %1393 }
0x1445   :  { %1396 = vst.msk [vmem:[#allocation3 + $0x8] sm:$0xff] %vm45_vm2, %v1394_v40 }
0x1499   :  { %v1380_v43 = vpop.permute.xlu2 %1379 }
0x149a   :  { %1383 = vst.msk [vmem:[#allocation5 + $0x38] sm:$0xff] %vm45_vm2, %v1380_v43 }
0x149b   :  { %1391 = vst.msk [vmem:[#allocation2 + $0x8] sm:$0xff] %vm45_vm2, %v1380_v43 }
0x14a1   :  { %v1404_v9 = vld [vmem:[#allocation5 + $0x38] sm:$0xff] }
0x14a2   :  { %1511 = vmatpush.xpose.msk.msrb.mxu0 %vm45_vm2, %v1404_v9 }
0x14a6   :  { %1512 = vmatpush.xpose.msk.msrb.mxu0 %vm45_vm2, %v1403_v15 }
0x14aa   :  { %1513 = vmatpush.xpose.msk.msrb.mxu0 %vm45_vm2, %v1402_v16 }
0x14ae   :  { %1514 = vmatpush.xpose.msk.msrb.mxu0 %vm45_vm2, %v1401_v17 }
0x14b2   :  { %1515 = vmatpush.xpose.msk.msrb.mxu0 %vm45_vm2, %v1400_v18 }
0x14b6   :  { %1516 = vmatpush.xpose.msk.msrb.mxu0 %vm45_vm2, %v1399_v19 }
0x14ba   :  { %1517 = vmatpush.xpose.msk.msrb.mxu0 %vm45_vm2, %v1398_v20 }
0x14be   :  { %1518 = vmatpush.xpose.msk.msrb.mxu0 %vm45_vm2, %v1397_v21 }
0x14c1   :  { %1519 = vmatmul.msk.f32.vlgmr.msrb.gmra.mxu0 %vm45_vm2, %v1405_v53 }
0x153e   :  { %v1450_v23 = vpop.f32.mrf.mxu0 }
0x153f   :  { %v1455_v24 = vadd.f32 %v1454_v22, %v1450_v23 }
0x1541   :  { %1457 = vst.msk [vmem:[%s2168_s11] sm:$0x1] %vm1456_vm10, %v1455_v24 }

</bundles_post_ra>
